<compile_context>
chip_gen: v5e
topology: v5e:2x2
jax: 0.10.0
libtpu: 0.0.40
codegen_flags: <defaults>
</compile_context>

<pallas_src>
import jax
import jax.numpy as jnp
from jax import lax
from jax.experimental import pallas as pl
from jax.experimental.pallas import tpu as pltpu

C = 244
EPS = 1e-5


def _bn_conv_kernel(x_ref, w_ref, gamma_ref, beta_ref, o_ref):
    # x_ref:     (C, S)  f32 activations, channels on sublanes, spatial on lanes
    # w_ref:     (C, C)  f32 1x1-conv weight (Cout, Cin)
    # gamma_ref: (C, 1)  f32 BN scale
    # beta_ref:  (C, 1)  f32 BN shift
    # o_ref:     (C, S)  f32 conv output
    x = x_ref[...]
    s = x.shape[1]
    inv_s = 1.0 / float(s)  # true sample count (N*H*W); static at trace time

    # Per-channel mean via the (otherwise idle) MXU: x @ ones(S,1) -> (C,1) sums.
    ones = jnp.ones((s, 1), dtype=jnp.float32)
    mean = jnp.dot(x, ones, preferred_element_type=jnp.float32) * inv_s  # (C,1)

    # Centered (two-pass) biased variance on XLU/VPU -> no catastrophic cancellation.
    xc = x - mean
    var = jnp.sum(xc * xc, axis=1, keepdims=True) * inv_s                # (C,1)

    # Fold the whole BN affine into one scale/shift pair (rsqrt goes to the EUP).
    scale = gamma_ref[...] * lax.rsqrt(var + EPS)                        # (C,1)
    y = xc * scale + beta_ref[...]                                       # BN output (C,S)

    # 1x1 conv == channel-mixing matmul on the MXU; bias-free per the module spec.
    o_ref[...] = jnp.dot(w_ref[...], y, preferred_element_type=jnp.float32)


@jax.jit
def bn_conv1x1(x_nchw, gamma, beta, w):
    n, c, h, wd = x_nchw.shape
    s = n * h * wd

    # NCHW -> (Cin, N*H*W). With N == 1 this is a metadata-only reshape (no HBM copy).
    x2d = jnp.transpose(x_nchw, (1, 0, 2, 3)).reshape(c, s)

    out2d = pl.pallas_call(
        _bn_conv_kernel,
        out_shape=jax.ShapeDtypeStruct((c, s), jnp.float32),
        in_specs=[
            pl.BlockSpec(memory_space=pltpu.MemorySpace.VMEM),  # x   (C, S)
            pl.BlockSpec(memory_space=pltpu.MemorySpace.VMEM),  # w   (C, C)
            pl.BlockSpec(memory_space=pltpu.MemorySpace.VMEM),  # gamma (C, 1)
            pl.BlockSpec(memory_space=pltpu.MemorySpace.VMEM),  # beta  (C, 1)
        ],
        out_specs=pl.BlockSpec(memory_space=pltpu.MemorySpace.VMEM),
        cost_estimate=pl.CostEstimate(
            flops=2 * c * c * s + 2 * c * s + 6 * c * s,
            transcendentals=c,
            bytes_accessed=4 * (2 * c * s + c * c + 2 * c),
        ),
    )(x2d, w, gamma.reshape(c, 1), beta.reshape(c, 1))

    # (Cout, N*H*W) -> NCHW (metadata-only for N == 1).
    return jnp.transpose(out2d.reshape(c, n, h, wd), (1, 0, 2, 3))


def _reference(x_nchw, gamma, beta, w):
    # Pure-JAX reference matching the PyTorch module's forward (training-mode BN + 1x1 conv).
    mean = jnp.mean(x_nchw, axis=(0, 2, 3), keepdims=True)
    var = jnp.mean((x_nchw - mean) ** 2, axis=(0, 2, 3), keepdims=True)
    xn = (x_nchw - mean) / jnp.sqrt(var + EPS)
    xn = xn * gamma[None, :, None, None] + beta[None, :, None, None]
    return jnp.einsum("oc,nchw->nohw", w, xn)


if __name__ == "__main__":
    key = jax.random.PRNGKey(0)
    kx, kg, kb, kw = jax.random.split(key, 4)

    # Input consistent with the module's forward: [1, 244, 14, 14]
    x = jax.random.normal(kx, (1, C, 14, 14), dtype=jnp.float32)

    # Deterministic synthetic parameters matching the PyTorch module's shapes.
    gamma = 1.0 + 0.1 * jax.random.normal(kg, (C,), dtype=jnp.float32)   # BN weight
    beta = 0.1 * jax.random.normal(kb, (C,), dtype=jnp.float32)          # BN bias
    # Conv2d(244, 244, 1, bias=False) weight, squeezed from (244, 244, 1, 1).
    w = jax.random.normal(kw, (C, C), dtype=jnp.float32) * (1.0 / jnp.sqrt(C))

    # TODO(synk): running_mean/running_var momentum-update buffers (track_running_stats)
    # are module state side-effects, not part of the returned tensor; not emitted here.
    out = jax.block_until_ready(bn_conv1x1(x, gamma, beta, w))

    ref = _reference(x, gamma, beta, w)
    assert out.shape == (1, C, 14, 14)
    err = float(jnp.max(jnp.abs(out - ref)))
    assert jnp.allclose(out, ref, atol=1e-3, rtol=1e-3), err

    print("KERNEL_OK")
</pallas_src>

<mosaic_0001>
module attributes {stable_mosaic.version = 11 : i64} {
  func.func @_bn_conv_kernel(%arg0: memref<244x196xf32, #tpu.memory_space<vmem>>, %arg1: memref<244x244xf32, #tpu.memory_space<vmem>>, %arg2: memref<244x1xf32, #tpu.memory_space<vmem>>, %arg3: memref<244x1xf32, #tpu.memory_space<vmem>>, %arg4: memref<244x196xf32, #tpu.memory_space<vmem>>) attributes {dimension_semantics = [], scalar_prefetch = 0 : i64, scratch_operands = 0 : i64, tpu.core_type = #tpu.core_type<tc>} {
    %c0 = arith.constant 0 : index
    %c0_0 = arith.constant 0 : index
    %0 = vector.load %arg0[%c0, %c0_0] : memref<244x196xf32, #tpu.memory_space<vmem>>, vector<244x196xf32>
    %cst = arith.constant 1.000000e+00 : f32
    %1 = vector.broadcast %cst : f32 to vector<196x1xf32>
    %cst_1 = arith.constant dense<0.000000e+00> : vector<244x1xf32>
    %2 = tpu.matmul %0, %1, %cst_1 {dimension_numbers = #tpu.dot_dimension_numbers<[1], [0], [0], [1], [0, 0, 1, 1], [], []>} : vector<244x196xf32>, vector<196x1xf32>, vector<244x1xf32> -> vector<244x1xf32>
    %cst_2 = arith.constant 0.00510204071 : f32
    %3 = vector.broadcast %cst_2 : f32 to vector<244x1xf32>
    %4 = arith.mulf %2, %3 : vector<244x1xf32>
    %5 = vector.broadcast %4 : vector<244x1xf32> to vector<244x196xf32>
    %6 = arith.subf %0, %5 : vector<244x196xf32>
    %7 = arith.mulf %6, %6 : vector<244x196xf32>
    %cst_3 = arith.constant dense<0.000000e+00> : vector<244xf32>
    %8 = vector.multi_reduction <add>, %7, %cst_3 [1] : vector<244x196xf32> to vector<244xf32>
    %9 = vector.shape_cast %8 : vector<244xf32> to vector<244x1xf32>
    %cst_4 = arith.constant 0.00510204071 : f32
    %10 = vector.broadcast %cst_4 : f32 to vector<244x1xf32>
    %11 = arith.mulf %9, %10 : vector<244x1xf32>
    %c0_5 = arith.constant 0 : index
    %c0_6 = arith.constant 0 : index
    %12 = vector.load %arg2[%c0_5, %c0_6] : memref<244x1xf32, #tpu.memory_space<vmem>>, vector<244x1xf32>
    %cst_7 = arith.constant 9.99999974E-6 : f32
    %13 = vector.broadcast %cst_7 : f32 to vector<244x1xf32>
    %14 = arith.addf %11, %13 : vector<244x1xf32>
    %15 = math.rsqrt %14 : vector<244x1xf32>
    %16 = arith.mulf %12, %15 : vector<244x1xf32>
    %17 = vector.broadcast %16 : vector<244x1xf32> to vector<244x196xf32>
    %18 = arith.mulf %6, %17 : vector<244x196xf32>
    %c0_8 = arith.constant 0 : index
    %c0_9 = arith.constant 0 : index
    %19 = vector.load %arg3[%c0_8, %c0_9] : memref<244x1xf32, #tpu.memory_space<vmem>>, vector<244x1xf32>
    %20 = vector.broadcast %19 : vector<244x1xf32> to vector<244x196xf32>
    %21 = arith.addf %18, %20 : vector<244x196xf32>
    %c0_10 = arith.constant 0 : index
    %c0_11 = arith.constant 0 : index
    %22 = vector.load %arg1[%c0_10, %c0_11] : memref<244x244xf32, #tpu.memory_space<vmem>>, vector<244x244xf32>
    %cst_12 = arith.constant dense<0.000000e+00> : vector<244x196xf32>
    %23 = tpu.matmul %22, %21, %cst_12 {dimension_numbers = #tpu.dot_dimension_numbers<[1], [0], [0], [1], [0, 0, 1, 1], [], []>} : vector<244x244xf32>, vector<244x196xf32>, vector<244x196xf32> -> vector<244x196xf32>
    %c0_13 = arith.constant 0 : index
    %c0_14 = arith.constant 0 : index
    %24 = vector.load %arg4[%c0_13, %c0_14] : memref<244x196xf32, #tpu.memory_space<vmem>>, vector<244x196xf32>
    tpu.vector_store %arg4[%c0_13, %c0_14], %23 {strides = array<i32>} : memref<244x196xf32, #tpu.memory_space<vmem>>, vector<244x196xf32>,
    return
  }
}

</mosaic_0001>

<bundles_post_ra>
// kernel: bn_conv1x1.1
= control target key start
LH: loop header
LB: loop body
LE: loop exit
PB: predicated region body
PF: predicated region fallthrough
CT: control target
= control target key end

     0   :  { %vm173_vm0 = vcmask 1043456   ;;  %v2616_v0 = vmov 1.0   ;;  %vm79_vm1 = vcmask 556032   ;;  %v2617_v24 = vmov 0   ;;  %s4728_s0 = inlined_call_operand.vmem [shape: f32[244,196], index: 0, kind: input, shape index: {}]   ;;  %s4729_s3 = inlined_call_operand.vmem [shape: f32[244,1], index: 3, kind: input, shape index: {}]   ;;  %s4730_s2 = inlined_call_operand.vmem [shape: f32[244,1], index: 2, kind: input, shape index: {}]   ;;  %s4731_s1 = inlined_call_operand.vmem [shape: f32[244,244], index: 1, kind: input, shape index: {}]   ;;  %s4732_s4 = inlined_call_operand.vmem [shape: f32[244,196], index: 4, kind: output, shape index: {}]  }
   0x1   :  { %177 = vmatpush.msra.mxu0 %v2616_v0  ;;  %2400 = vmatpush.msk.msra.mxu1 %vm173_vm0, %v2616_v0  ;;  %v18_v1 = vld [vmem:[%s4728_s0 + $0x8] sm:$0xff]  ;;  %v20_v2 = vld [vmem:[%s4728_s0 + $0x18] sm:$0xff]  ;;  %v17_v3 = vld [vmem:[%s4728_s0] sm:$0xff]  ;;  %vm828_vm2 = vcmask 551936  }
   0x2   :  { %2496 = vmatpush.msk.msra.mxu2 %vm173_vm0, %v2616_v0  ;;  %v22_v4 = vld [vmem:[%s4728_s0 + $0x28] sm:$0xff]  ;;  %v19_v5 = vld [vmem:[%s4728_s0 + $0x10] sm:$0xff]  ;;  %v24_v6 = vld [vmem:[%s4728_s0 + $0x38] sm:$0xff]  ;;  %2537 = vset.pattern.permute.xlu2 %v2617_v24 }
   0x3   :  { %178 = vmatpush.msra.mxu0 %v2616_v0  ;;  %295 = vmatpush.msra.mxu1 %v2616_v0  ;;  %v21_v7 = vld [vmem:[%s4728_s0 + $0x20] sm:$0xff]  ;;  %v2673_v8 = vld [vmem:[%s4728_s0 + $0x48] sm:$0xff]  ;;  %v23_v9 = vld [vmem:[%s4728_s0 + $0x30] sm:$0xff] }
   0x4   :  { %2497 = vmatpush.msra.mxu2 %v2616_v0  ;;  %v28_v10 = vld [vmem:[%s4728_s0 + $0x58] sm:$0xff]  ;;  %v2687_v11 = vld [vmem:[%s4728_s0 + $0x40] sm:$0xff]  ;;  %v30_v12 = vld [vmem:[%s4728_s0 + $0x68] sm:$0xff]  ;;  %2538 = vset.pattern.permute.xlu1 %v2617_v24 }
   0x5   :  { %179 = vmatpush.msra.mxu0 %v2616_v0  ;;  %296 = vmatpush.msra.mxu1 %v2616_v0  ;;  %v27_v13 = vld [vmem:[%s4728_s0 + $0x50] sm:$0xff]  ;;  %v2700_v14 = vld [vmem:[%s4728_s0 + $0x78] sm:$0xff]  ;;  %v29_v15 = vld [vmem:[%s4728_s0 + $0x60] sm:$0xff] }
   0x6   :  { %2498 = vmatpush.msra.mxu2 %v2616_v0  ;;  %v34_v16 = vld [vmem:[%s4728_s0 + $0x88] sm:$0xff]  ;;  %v2714_v17 = vld [vmem:[%s4728_s0 + $0x70] sm:$0xff]  ;;  %v2719_v18 = vld [vmem:[%s4728_s0 + $0x98] sm:$0xff]  ;;  %2539 = vset.pattern.permute.xlu0 %v2617_v24 }
   0x7   :  { %180 = vmatpush.msra.mxu0 %v2616_v0  ;;  %297 = vmatpush.msra.mxu1 %v2616_v0  ;;  %4791 = vst [vmem:[#allocation2_spill] sm:$0xff] %v2719_v18  ;;  %v33_v19 = vld [vmem:[%s4728_s0 + $0x80] sm:$0xff]  ;;  %v2730_v20 = vld [vmem:[%s4728_s0 + $0xa8] sm:$0xff]  ;;  %v2737_v21 = vld [vmem:[%s4728_s0 + $0x90] sm:$0xff] }
   0x8   :  { %2499 = vmatpush.msra.mxu2 %v2616_v0  ;;  %4792 = vst [vmem:[#allocation3_spill] sm:$0xff] %v2737_v21  ;;  %v2742_v22 = vld [vmem:[%s4728_s0 + $0xb8] sm:$0xff]  ;;  %v1514_v23 = vld [vmem:[%s4729_s3 + $0xf0] sm:$0xf]  ;;  %v2753_v25 = vld [vmem:[%s4728_s0 + $0xa0] sm:$0xff] }
   0x9   :  { %181 = vmatpush.msra.mxu0 %v2616_v0  ;;  %298 = vmatpush.msra.mxu1 %v2616_v0  ;;  %4793 = vst [vmem:[#allocation4_spill] sm:$0xff] %v2742_v22  ;;  %v2758_v26 = vld [vmem:[%s4728_s0 + $0xc8] sm:$0xff]  ;;  %v2769_v28 = vld [vmem:[%s4728_s0 + $0xb0] sm:$0xff]  ;;  %v2774_v29 = vld [vmem:[%s4728_s0 + $0xd8] sm:$0xff] }
   0xa   :  { %2500 = vmatpush.msra.mxu2 %v2616_v0  ;;  %1667 = vperm.xlu2 %2537, %v1514_v23   ;;  %v1513_v27 = vld [vmem:[%s4729_s3 + $0xe8] sm:$0xff]  ;;  %4794 = vst [vmem:[#allocation5_spill] sm:$0xff] %v2769_v28  ;;  %v1512_v30 = vld [vmem:[%s4729_s3 + $0xe0] sm:$0xff]  ;;  %v1511_v33 = vld [vmem:[%s4729_s3 + $0xd8] sm:$0xff] }
   0xb   :  { %182 = vmatpush.msra.mxu0 %v2616_v0  ;;  %299 = vmatpush.msra.mxu1 %v2616_v0  ;;  %v2785_v31 = vld [vmem:[%s4728_s0 + $0xc0] sm:$0xff]  ;;  %v2790_v32 = vld [vmem:[%s4728_s0 + $0xe8] sm:$0xff]  ;;  %v2799_v34 = vld [vmem:[%s4728_s0 + $0x118] sm:$0xff] }
   0xc   :  { %2501 = vmatpush.msra.mxu2 %v2616_v0  ;;  %v2808_v35 = vld [vmem:[%s4728_s0 + $0xd0] sm:$0xff]  ;;  %v2813_v36 = vld [vmem:[%s4728_s0 + $0xf8] sm:$0xff]  ;;  %v2822_v38 = vld [vmem:[%s4728_s0 + $0x128] sm:$0xff] }
   0xd   :  { %183 = vmatpush.msra.mxu0 %v2616_v0  ;;  %300 = vmatpush.msra.mxu1 %v2616_v0  ;;  %v1510_v37 = vld [vmem:[%s4729_s3 + $0xd0] sm:$0xff]  ;;  %v2831_v39 = vld [vmem:[%s4728_s0 + $0xe0] sm:$0xff]  ;;  %v2838_v41 = vld [vmem:[%s4728_s0 + $0x108] sm:$0xff] }
   0xe   :  { %2502 = vmatpush.msra.mxu2 %v2616_v0  ;;  %4795 = vst [vmem:[#allocation6_spill] sm:$0xff] %v2831_v39  ;;  %v1509_v42 = vld [vmem:[%s4729_s3 + $0xc8] sm:$0xff]  ;;  %v2847_v43 = vld [vmem:[%s4728_s0 + $0x138] sm:$0xff]  ;;  %v2856_v44 = vld [vmem:[%s4728_s0 + $0xf0] sm:$0xff] }
   0xf   :  { %184 = vmatpush.msra.mxu0 %v2616_v0  ;;  %301 = vmatpush.msra.mxu1 %v2616_v0  ;;  %v1508_v46 = vld [vmem:[%s4729_s3 + $0xc0] sm:$0xff]  ;;  %v2865_v47 = vld [vmem:[%s4728_s0 + $0x148] sm:$0xff]  ;;  %v1507_v51 = vld [vmem:[%s4729_s3 + $0xb8] sm:$0xff] }
  0x10   :  { %2503 = vmatpush.msra.mxu2 %v2616_v0  ;;  %v2874_v49 = vld [vmem:[%s4728_s0 + $0x100] sm:$0xff]  ;;  %v2883_v52 = vld [vmem:[%s4728_s0 + $0x158] sm:$0xff]  ;;  %v2890_v54 = vld [vmem:[%s4728_s0 + $0x110] sm:$0xff] }
  0x11   :  { %185 = vmatpush.msra.mxu0 %v2616_v0  ;;  %302 = vmatpush.msra.mxu1 %v2616_v0  ;;  %v1506_v58 = vld [vmem:[%s4729_s3 + $0xb0] sm:$0xff]  ;;  %v2899_v59 = vld [vmem:[%s4728_s0 + $0x168] sm:$0xff]  ;;  %v2906_v61 = vld [vmem:[%s4728_s0 + $0x120] sm:$0xff] }
  0x12   :  { %2401 = vmatmul.msk.f32.vlgmr.msra.gmra.mxu1 %vm79_vm1, %v18_v1  ;;  %2504 = vmatpush.msra.mxu2 %v2616_v0  ;;  %v1505_v1 = vld [vmem:[%s4729_s3 + $0xa8] sm:$0xff]  ;;  %v1503_v23 = vld [vmem:[%s4729_s3 + $0x98] sm:$0xff] }
  0x13   :  { %186 = vmatpush.msra.mxu0 %v2616_v0  ;;  %1662 = vperm.xlu2 %2537, %v1513_v27   ;;  %v2947_v24 = vld [vmem:[%s4728_s0 + $0x198] sm:$0xff] }
  0x14   :  { %2418 = vmatmul.msk.f32.vlgmr.msra.gmra.mxu2 %vm79_vm1, %v2799_v34 }
  0x15   :  { %187 = vmatpush.msra.mxu0 %v2616_v0 }
  0x17   :  { %188 = vmatpush.msra.mxu0 %v2616_v0 }
  0x19   :  { %189 = vmatpush.msra.mxu0 %v2616_v0 }
  0x1a   :  { %2402 = vmatmul.msk.f32.gmra.mxu1 %vm79_vm1, %v20_v2  ;;  %v2915_v2 = vld [vmem:[%s4728_s0 + $0x178] sm:$0xff] }
  0x1b   :  { %190 = vmatpush.msra.mxu0 %v2616_v0  ;;  %1657 = vperm.xlu2 %2537, %v1512_v30   ;;  %v2954_v30 = vld [vmem:[%s4728_s0 + $0x150] sm:$0xff] }
  0x1c   :  { %2419 = vmatmul.msk.f32.gmra.mxu2 %vm79_vm1, %v2822_v38 }
  0x1d   :  { %191 = vmatpush.msra.mxu0 %v2616_v0 }
  0x1f   :  { %192 = vmatpush.msra.mxu0 %v2616_v0 }
  0x20   :  { %193 = vmatmul.f32.vlgmr.msra.gmra.mxu0 %v17_v3 }
  0x22   :  { %2403 = vmatmul.msk.f32.gmra.mxu1 %vm79_vm1, %v22_v4  ;;  %v2922_v4 = vld [vmem:[%s4728_s0 + $0x130] sm:$0xff] }
  0x23   :  { %1652 = vperm.xlu2 %2537, %v1511_v33  }
  0x24   :  { %2420 = vmatmul.msk.f32.gmra.mxu2 %vm79_vm1, %v2847_v43 }
  0x28   :  { %196 = vmatmul.f32.gmra.mxu0 %v19_v5 }
  0x2a   :  { %2404 = vmatmul.msk.f32.gmra.mxu1 %vm79_vm1, %v24_v6 }
  0x2b   :  { %1647 = vperm.xlu2 %2537, %v1510_v37  }
  0x2c   :  { %2421 = vmatmul.msk.f32.gmra.mxu2 %vm79_vm1, %v2865_v47 }
  0x30   :  { %199 = vmatmul.f32.gmra.mxu0 %v21_v7 }
  0x32   :  { %2405 = vmatmul.msk.f32.gmra.mxu1 %vm79_vm1, %v2673_v8 }
  0x33   :  { %1642 = vperm.xlu2 %2537, %v1509_v42  }
  0x34   :  { %2422 = vmatmul.msk.f32.gmra.mxu2 %vm79_vm1, %v2883_v52 }
  0x38   :  { %202 = vmatmul.f32.gmra.mxu0 %v23_v9  ;;  %v1504_v9 = vld [vmem:[%s4729_s3 + $0xa0] sm:$0xff] }
  0x3a   :  { %2406 = vmatmul.msk.f32.gmra.mxu1 %vm79_vm1, %v28_v10  ;;  %v2931_v10 = vld [vmem:[%s4728_s0 + $0x188] sm:$0xff] }
  0x3b   :  { %1637 = vperm.xlu2 %2537, %v1508_v46   ;;  %v2963_v46 = vld [vmem:[%s4728_s0 + $0x1a8] sm:$0xff] }
  0x3c   :  { %2423 = vmatmul.msk.f32.gmra.mxu2 %vm79_vm1, %v2899_v59 }
  0x40   :  { %205 = vmatmul.f32.gmra.mxu0 %v2687_v11 }
  0x42   :  { %2407 = vmatmul.msk.f32.gmra.mxu1 %vm79_vm1, %v30_v12 }
  0x43   :  { %1632 = vperm.xlu2 %2537, %v1507_v51   ;;  %v2970_v51 = vld [vmem:[%s4728_s0 + $0x160] sm:$0xff] }
  0x44   :  { %2424 = vmatmul.msk.f32.gmra.mxu2 %vm79_vm1, %v2915_v2 }
  0x48   :  { %208 = vmatmul.f32.gmra.mxu0 %v27_v13  ;;  %v2938_v13 = vld [vmem:[%s4728_s0 + $0x140] sm:$0xff] }
  0x4a   :  { %2408 = vmatmul.msk.f32.gmra.mxu1 %vm79_vm1, %v2700_v14 }
  0x4b   :  { %1627 = vperm.xlu2 %2537, %v1506_v58  }
  0x4c   :  { %2425 = vmatmul.msk.f32.gmra.mxu2 %vm79_vm1, %v2931_v10 }
  0x50   :  { %211 = vmatmul.f32.gmra.mxu0 %v29_v15 }
  0x52   :  { %2409 = vmatmul.msk.f32.gmra.mxu1 %vm79_vm1, %v34_v16 }
  0x53   :  { %1622 = vperm.xlu2 %2537, %v1505_v1   ;;  %v2989_v1 = vld [vmem:[%s4728_s0 + $0x1c8] sm:$0xff] }
  0x54   :  { %2426 = vmatmul.msk.f32.gmra.mxu2 %vm79_vm1, %v2947_v24 }
  0x58   :  { %214 = vmatmul.f32.gmra.mxu0 %v2714_v17 }
  0x5a   :  { %2410 = vmatmul.msk.f32.gmra.mxu1 %vm79_vm1, %v2719_v18 }
  0x5b   :  { %1617 = vperm.xlu2 %2537, %v1504_v9  }
  0x5c   :  { %2427 = vmatmul.msk.f32.gmra.mxu2 %vm79_vm1, %v2963_v46 }
  0x60   :  { %217 = vmatmul.f32.gmra.mxu0 %v33_v19 }
  0x62   :  { %2411 = vmatmul.msk.f32.gmra.mxu1 %vm79_vm1, %v2730_v20 }
  0x63   :  { %1612 = vperm.xlu2 %2537, %v1503_v23  }
  0x68   :  { %220 = vmatmul.f32.gmra.mxu0 %v2737_v21 }
  0x6a   :  { %2412 = vmatmul.msk.f32.gmra.mxu1 %vm79_vm1, %v2742_v22 }
  0x70   :  { %223 = vmatmul.f32.gmra.mxu0 %v2753_v25 }
  0x72   :  { %2413 = vmatmul.msk.f32.gmra.mxu1 %vm79_vm1, %v2758_v26 }
  0x78   :  { %226 = vmatmul.f32.gmra.mxu0 %v2769_v28 }
  0x7a   :  { %2414 = vmatmul.msk.f32.gmra.mxu1 %vm79_vm1, %v2774_v29 }
  0x80   :  { %229 = vmatmul.f32.gmra.mxu0 %v2785_v31 }
  0x82   :  { %2415 = vmatmul.msk.f32.gmra.mxu1 %vm79_vm1, %v2790_v32 }
  0x88   :  { %232 = vmatmul.f32.gmra.mxu0 %v2808_v35 }
  0x8a   :  { %2416 = vmatmul.msk.f32.gmra.mxu1 %vm79_vm1, %v2813_v36 }
  0x8f   :  { %v2833_v40 = vpop.f32.mrf.mxu1 }
  0x90   :  { %235 = vmatmul.f32.gmra.mxu0 %v2831_v39 }
  0x92   :  { %2417 = vmatmul.msk.f32.gmra.mxu1 %vm79_vm1, %v2838_v41 }
  0x97   :  { %v307_v45 = vpop.f32.mrf.mxu1 }
  0x98   :  { %238 = vmatmul.f32.gmra.mxu0 %v2856_v44 }
  0x9d   :  { %v2869_v48 = vpop.f32.mrf.mxu0 }
  0x9f   :  { %v310_v50 = vpop.f32.mrf.mxu1 }
  0xa0   :  { %241 = vmatmul.f32.gmra.mxu0 %v2874_v49 }
  0xa5   :  { %v197_v53 = vpop.f32.mrf.mxu0 }
  0xa6   :  { %v308_v55 = vadd.f32 %v307_v45, %v197_v53  ;;  %v1502_v45 = vld [vmem:[%s4729_s3 + $0x90] sm:$0xff] }
  0xa7   :  { %v313_v56 = vpop.f32.mrf.mxu1  ;;  %1607 = vperm.xlu2 %2537, %v1502_v45  }
  0xa8   :  { %244 = vmatmul.f32.gmra.mxu0 %v2890_v54  ;;  %v398_v57 = vmul.f32 0.0051020407, %v308_v55 }
  0xaa   :  { %435 = vperm.xlu1 %2538, %v398_v57   ;;  %v2976_v57 = vld [vmem:[%s4728_s0 + $0x1b8] sm:$0xff] }
  0xab   :  { %2428 = vmatmul.msk.f32.gmra.mxu2 %vm79_vm1, %v2976_v57 }
  0xad   :  { %v200_v60 = vpop.f32.mrf.mxu0 }
  0xae   :  { %v311_v62 = vadd.f32 %v310_v50, %v200_v60  ;;  %v2983_v60 = vld [vmem:[%s4728_s0 + $0x170] sm:$0xff] }
  0xaf   :  { %v316_v63 = vpop.f32.mrf.mxu1 }
  0xb0   :  { %v399_v0 = vmul.f32 0.0051020407, %v311_v62  ;;  %247 = vmatmul.f32.gmra.mxu0 %v2906_v61 }
  0xb2   :  { %440 = vperm.xlu1 %2538, %v399_v0  }
  0xb3   :  { %2429 = vmatmul.msk.f32.gmra.mxu2 %vm79_vm1, %v2989_v1 }
  0xb5   :  { %v203_v3 = vpop.f32.mrf.mxu0 }
  0xb6   :  { %v314_v5 = vadd.f32 %v313_v56, %v203_v3 }
  0xb7   :  { %v319_v6 = vpop.f32.mrf.mxu1 }
  0xb8   :  { %v400_v7 = vmul.f32 0.0051020407, %v314_v5  ;;  %250 = vmatmul.f32.gmra.mxu0 %v2922_v4  ;;  %v2996_v5 = vld [vmem:[%s4728_s0 + $0x180] sm:$0xff] }
  0xba   :  { %445 = vperm.xlu1 %2538, %v400_v7  }
  0xbd   :  { %v206_v12 = vpop.f32.mrf.mxu0 }
  0xbe   :  { %v317_v15 = vadd.f32 %v316_v63, %v206_v12  ;;  %v3002_v12 = vld [vmem:[%s4728_s0 + $0x1d8] sm:$0xff] }
  0xbf   :  { %v322_v16 = vpop.f32.mrf.mxu1  ;;  %2430 = vmatmul.msk.f32.gmra.mxu2 %vm79_vm1, %v3002_v12 }
  0xc0   :  { %v401_v19 = vmul.f32 0.0051020407, %v317_v15  ;;  %253 = vmatmul.f32.gmra.mxu0 %v2938_v13 }
  0xc2   :  { %450 = vperm.xlu1 %2538, %v401_v19  }
  0xc5   :  { %v209_v27 = vpop.f32.mrf.mxu0 }
  0xc6   :  { %v320_v33 = vadd.f32 %v319_v6, %v209_v27  ;;  %v3015_v27 = vld [vmem:[%s4728_s0 + $0x1e8] sm:$0xf] }
  0xc7   :  { %v325_v37 = vpop.f32.mrf.mxu1  ;;  %2431 = vmatmul.msk.f32.gmra.mxu2 %vm79_vm1, %v3015_v27 }
  0xc8   :  { %v402_v42 = vmul.f32 0.0051020407, %v320_v33  ;;  %256 = vmatmul.f32.gmra.mxu0 %v2954_v30 }
  0xca   :  { %455 = vperm.xlu1 %2538, %v402_v42   ;;  %v3022_v42 = vld [vmem:[%s4728_s0 + $0x1a0] sm:$0xff] }
  0xcd   :  { %v212_v50 = vpop.f32.mrf.mxu0 }
  0xce   :  { %v323_v53 = vadd.f32 %v322_v16, %v212_v50  ;;  %v3009_v16 = vld [vmem:[%s4728_s0 + $0x190] sm:$0xff] }
  0xcf   :  { %v328_v55 = vpop.f32.mrf.mxu1 }
  0xd0   :  { %v403_v56 = vmul.f32 0.0051020407, %v323_v53  ;;  %259 = vmatmul.f32.gmra.mxu0 %v2970_v51 }
  0xd2   :  { %460 = vperm.xlu1 %2538, %v403_v56   ;;  %v3028_v56 = vld [vmem:[%s4728_s0 + $0x1b0] sm:$0xff] }
  0xd5   :  { %v215_v58 = vpop.f32.mrf.mxu0 }
  0xd6   :  { %v326_v62 = vadd.f32 %v325_v37, %v215_v58 }
  0xd7   :  { %v331_v63 = vpop.f32.mrf.mxu1 }
  0xd8   :  { %v404_v0 = vmul.f32 0.0051020407, %v326_v62  ;;  %262 = vmatmul.f32.gmra.mxu0 %v2983_v60 }
  0xda   :  { %465 = vperm.xlu1 %2538, %v404_v0   ;;  %v3034_v0 = vld [vmem:[%s4728_s0 + $0x1c0] sm:$0xff] }
  0xdd   :  { %v218_v3 = vpop.f32.mrf.mxu0 }
  0xde   :  { %v329_v6 = vadd.f32 %v328_v55, %v218_v3 }
  0xdf   :  { %v334_v7 = vpop.f32.mrf.mxu1 }
  0xe0   :  { %v405_v9 = vmul.f32 0.0051020407, %v329_v6  ;;  %265 = vmatmul.f32.gmra.mxu0 %v2996_v5 }
  0xe2   :  { %470 = vperm.xlu1 %2538, %v405_v9  }
  0xe5   :  { %v221_v15 = vpop.f32.mrf.mxu0 }
  0xe6   :  { %v332_v19 = vadd.f32 %v331_v63, %v221_v15  ;;  %v3040_v15 = vld [vmem:[%s4728_s0 + $0x1d0] sm:$0xff] }
  0xe7   :  { %v337_v33 = vpop.f32.mrf.mxu1 }
  0xe8   :  { %v406_v23 = vmul.f32 0.0051020407, %v332_v19  ;;  %268 = vmatmul.f32.gmra.mxu0 %v3009_v16 }
  0xea   :  { %475 = vperm.xlu1 %2538, %v406_v23  }
  0xed   :  { %v224_v37 = vpop.f32.mrf.mxu0 }
  0xee   :  { %v335_v45 = vadd.f32 %v334_v7, %v224_v37  ;;  %v355_v37 = vpop.f32.mrf.mxu2 }
  0xef   :  { %v340_v53 = vpop.f32.mrf.mxu1 }
  0xf0   :  { %v407_v50 = vmul.f32 0.0051020407, %v335_v45  ;;  %271 = vmatmul.f32.gmra.mxu0 %v3022_v42 }
  0xf2   :  { %480 = vperm.xlu1 %2538, %v407_v50   ;;  %v3046_v50 = vld [vmem:[%s4728_s0 + $0x1e0] sm:$0xf] }
  0xf5   :  { %v227_v55 = vpop.f32.mrf.mxu0 }
  0xf6   :  { %v338_v58 = vadd.f32 %v337_v33, %v227_v55 }
  0xf7   :  { %v343_v3 = vpop.f32.mrf.mxu1 }
  0xf8   :  { %v408_v62 = vmul.f32 0.0051020407, %v338_v58  ;;  %274 = vmatmul.f32.gmra.mxu0 %v3028_v56 }
  0xfa   :  { %485 = vperm.xlu1 %2538, %v408_v62   ;;  %v3049_v62 = vpop.permute.xlu2 %1667 }
  0xfb   :  { %4796 = vst [vmem:[#allocation7_spill] sm:$0xff] %v3049_v62 }
  0xfd   :  { %v230_v63 = vpop.f32.mrf.mxu0 }
  0xfe   :  { %v341_v6 = vadd.f32 %v340_v53, %v230_v63  ;;  %v358_v63 = vpop.f32.mrf.mxu2 }
  0xff   :  { %v346_v23 = vpop.f32.mrf.mxu1 }
 0x100   :  { %v409_v7 = vmul.f32 0.0051020407, %v341_v6  ;;  %277 = vmatmul.f32.gmra.mxu0 %v3034_v0 }
 0x102   :  { %490 = vperm.xlu1 %2538, %v409_v7  }
 0x105   :  { %v233_v9 = vpop.f32.mrf.mxu0 }
 0x106   :  { %v344_v19 = vadd.f32 %v343_v3, %v233_v9  ;;  %v361_v28 = vpop.f32.mrf.mxu2 }
 0x107   :  { %v349_v58 = vpop.f32.mrf.mxu1 }
 0x108   :  { %v410_v33 = vmul.f32 0.0051020407, %v344_v19  ;;  %280 = vmatmul.f32.gmra.mxu0 %v3040_v15  ;;  %v3051_v19 = vpop.permute.xlu2 %1662 }
 0x109   :  { %4797 = vst [vmem:[#allocation8_spill] sm:$0xff] %v3051_v19 }
 0x10a   :  { %495 = vperm.xlu1 %2538, %v410_v33  }
 0x10d   :  { %v236_v45 = vpop.f32.mrf.mxu0 }
 0x10e   :  { %v347_v53 = vadd.f32 %v346_v23, %v236_v45 }
 0x10f   :  { %v352_v9 = vpop.f32.mrf.mxu1 }
 0x110   :  { %v411_v55 = vmul.f32 0.0051020407, %v347_v53  ;;  %283 = vmatmul.f32.gmra.mxu0 %v3046_v50  ;;  %v3055_v53 = vpop.permute.xlu2 %1657 }
 0x111   :  { %4799 = vst [vmem:[#allocation10_spill] sm:$0xff] %v3055_v53 }
 0x112   :  { %500 = vperm.xlu1 %2538, %v411_v55   ;;  %v364_v55 = vpop.f32.mrf.mxu2 }
 0x115   :  { %v239_v3 = vpop.f32.mrf.mxu0 }
 0x116   :  { %v350_v6 = vadd.f32 %v349_v58, %v239_v3 }
 0x118   :  { %v412_v7 = vmul.f32 0.0051020407, %v350_v6 }
 0x11a   :  { %505 = vperm.xlu2 %2537, %v412_v7   ;;  %v3059_v7 = vpop.permute.xlu2 %1652  ;;  %v367_v39 = vpop.f32.mrf.mxu2 }
 0x11b   :  { %4801 = vst [vmem:[#allocation12_spill] sm:$0xff] %v3059_v7 }
 0x11c   :  { %v3053_v23 = vpop.permute.xlu1 %435 }
 0x11d   :  { %v242_v33 = vpop.f32.mrf.mxu0  ;;  %4798 = vst [vmem:[#allocation9_spill] sm:$0xff] %v3053_v23 }
 0x11e   :  { %v353_v21 = vadd.f32 %v352_v9, %v242_v33 }
 0x120   :  { %v413_v22 = vmul.f32 0.0051020407, %v353_v21 }
 0x122   :  { %510 = vperm.xlu2 %2537, %v413_v22   ;;  %v3063_v23 = vpop.permute.xlu2 %1647 }
 0x123   :  { %4803 = vst [vmem:[#allocation14_spill] sm:$0xff] %v3063_v23 }
 0x124   :  { %v3057_v58 = vpop.permute.xlu1 %440 }
 0x125   :  { %v245_v45 = vpop.f32.mrf.mxu0  ;;  %4800 = vst [vmem:[#allocation11_spill] sm:$0xff] %v3057_v58 }
 0x126   :  { %v356_v62 = vadd.f32 %v355_v37, %v245_v45  ;;  %v370_v37 = vpop.f32.mrf.mxu2 }
 0x128   :  { %v414_v18 = vmul.f32 0.0051020407, %v356_v62 }
 0x12a   :  { %515 = vperm.xlu1 %2538, %v414_v18  }
 0x12c   :  { %v3061_v21 = vpop.permute.xlu1 %445 }
 0x12d   :  { %v248_v3 = vpop.f32.mrf.mxu0  ;;  %4802 = vst [vmem:[#allocation13_spill] sm:$0xff] %v3061_v21 }
 0x12e   :  { %v359_v6 = vadd.f32 %v358_v63, %v248_v3  ;;  %v3067_v63 = vpop.permute.xlu2 %1642 }
 0x12f   :  { %4804 = vst [vmem:[#allocation15_spill] sm:$0xff] %v3067_v63 }
 0x130   :  { %v415_v19 = vmul.f32 0.0051020407, %v359_v6  ;;  %v373_v6 = vpop.f32.mrf.mxu2 }
 0x132   :  { %520 = vperm.xlu0 %2539, %v415_v19  }
 0x134   :  { %v3065_v45 = vpop.permute.xlu1 %450 }
 0x135   :  { %v251_v9 = vpop.f32.mrf.mxu0 }
 0x136   :  { %v362_v22 = vadd.f32 %v361_v28, %v251_v9  ;;  %v3071_v9 = vpop.permute.xlu2 %1637 }
 0x137   :  { %4806 = vst [vmem:[#allocation17_spill] sm:$0xff] %v3071_v9 }
 0x138   :  { %v416_v33 = vmul.f32 0.0051020407, %v362_v22 }
 0x13a   :  { %525 = vperm.xlu2 %2537, %v416_v33   ;;  %v376_v33 = vpop.f32.mrf.mxu2 }
 0x13c   :  { %v3069_v58 = vpop.permute.xlu1 %455 }
 0x13d   :  { %v254_v62 = vpop.f32.mrf.mxu0  ;;  %4805 = vst [vmem:[#allocation16_spill] sm:$0xff] %v3069_v58 }
 0x13e   :  { %v365_v18 = vadd.f32 %v364_v55, %v254_v62 }
 0x140   :  { %v417_v53 = vmul.f32 0.0051020407, %v365_v18  ;;  %v3075_v18 = vpop.permute.xlu2 %1632 }
 0x141   :  { %4808 = vst [vmem:[#allocation19_spill] sm:$0xff] %v3075_v18 }
 0x142   :  { %530 = vperm.xlu1 %2538, %v417_v53   ;;  %v379_v21 = vpop.f32.mrf.mxu2 }
 0x144   :  { %v3073_v55 = vpop.permute.xlu1 %460 }
 0x145   :  { %v257_v3 = vpop.f32.mrf.mxu0  ;;  %4807 = vst [vmem:[#allocation18_spill] sm:$0xff] %v3073_v55 }
 0x146   :  { %v368_v19 = vadd.f32 %v367_v39, %v257_v3 }
 0x148   :  { %v418_v7 = vmul.f32 0.0051020407, %v368_v19  ;;  %v3079_v58 = vpop.permute.xlu2 %1627 }
 0x149   :  { %4809 = vst [vmem:[#allocation20_spill] sm:$0xff] %v3079_v58 }
 0x14a   :  { %535 = vperm.xlu0 %2539, %v418_v7  }
 0x14c   :  { %v3077_v39 = vpop.permute.xlu1 %465 }
 0x14d   :  { %v260_v28 = vpop.f32.mrf.mxu0 }
 0x14e   :  { %v371_v22 = vadd.f32 %v370_v37, %v260_v28  ;;  %v382_v37 = vpop.f32.mrf.mxu2 }
 0x150   :  { %v419_v23 = vmul.f32 0.0051020407, %v371_v22 }
 0x152   :  { %540 = vperm.xlu2 %2537, %v419_v23  }
 0x154   :  { %v3081_v22 = vpop.permute.xlu1 %470 }
 0x155   :  { %v263_v62 = vpop.f32.mrf.mxu0  ;;  %4810 = vst [vmem:[#allocation21_spill] sm:$0xff] %v3081_v22 }
 0x156   :  { %v374_v53 = vadd.f32 %v373_v6, %v263_v62  ;;  %v3083_v6 = vpop.permute.xlu2 %1622 }
 0x157   :  { %4811 = vst [vmem:[#allocation22_spill] sm:$0xff] %v3083_v6 }
 0x158   :  { %v420_v63 = vmul.f32 0.0051020407, %v374_v53  ;;  %v385_v53 = vpop.f32.mrf.mxu2 }
 0x15a   :  { %545 = vperm.xlu1 %2538, %v420_v63  }
 0x15c   :  { %v3085_v55 = vpop.permute.xlu1 %475 }
 0x15d   :  { %v266_v3 = vpop.f32.mrf.mxu0  ;;  %4812 = vst [vmem:[#allocation23_spill] sm:$0xff] %v3085_v55 }
 0x15e   :  { %v377_v7 = vadd.f32 %v376_v33, %v266_v3  ;;  %v3087_v3 = vpop.permute.xlu2 %1617 }
 0x15f   :  { %4813 = vst [vmem:[#allocation24_spill] sm:$0xff] %v3087_v3 }
 0x160   :  { %v421_v19 = vmul.f32 0.0051020407, %v377_v7 }
 0x162   :  { %550 = vperm.xlu0 %2539, %v421_v19   ;;  %v388_v19 = vpop.f32.mrf.mxu2 }
 0x165   :  { %v269_v28 = vpop.f32.mrf.mxu0 }
 0x166   :  { %v380_v23 = vadd.f32 %v379_v21, %v269_v28  ;;  %v3089_v21 = vpop.permute.xlu1 %480 }
 0x168   :  { %v422_v9 = vmul.f32 0.0051020407, %v380_v23  ;;  %v3091_v23 = vpop.permute.xlu2 %1612 }
 0x169   :  { %4814 = vst [vmem:[#allocation25_spill] sm:$0xff] %v3091_v23 }
 0x16a   :  { %555 = vperm.xlu2 %2537, %v422_v9   ;;  %v391_v22 = vpop.f32.mrf.mxu2 }
 0x16d   :  { %v272_v62 = vpop.f32.mrf.mxu0 }
 0x16e   :  { %v383_v63 = vadd.f32 %v382_v37, %v272_v62  ;;  %v3093_v37 = vpop.permute.xlu1 %485 }
 0x170   :  { %v423_v18 = vmul.f32 0.0051020407, %v383_v63  ;;  %v3095_v55 = vpop.permute.xlu2 %1607 }
 0x171   :  { %4815 = vst [vmem:[#allocation26_spill] sm:$0xff] %v3095_v55 }
 0x172   :  { %560 = vperm.xlu2 %2537, %v423_v18  }
 0x175   :  { %v275_v33 = vpop.f32.mrf.mxu0 }
 0x176   :  { %v386_v7 = vadd.f32 %v385_v53, %v275_v33  ;;  %v394_v53 = vpop.f32.mrf.mxu2 }
 0x178   :  { %v424_v58 = vmul.f32 0.0051020407, %v386_v7  ;;  %v3097_v7 = vpop.permute.xlu1 %490 }
 0x17a   :  { %565 = vperm.xlu1 %2538, %v424_v58  }
 0x17d   :  { %v278_v28 = vpop.f32.mrf.mxu0 }
 0x17e   :  { %v389_v9 = vadd.f32 %v388_v19, %v278_v28  ;;  %v3099_v19 = vpop.permute.xlu2 %505 }
 0x180   :  { %v425_v6 = vmul.f32 0.0051020407, %v389_v9  ;;  %v3101_v28 = vpop.permute.xlu1 %495 }
 0x182   :  { %570 = vperm.xlu1 %2538, %v425_v6  }
 0x185   :  { %v281_v62 = vpop.f32.mrf.mxu0 }
 0x186   :  { %v392_v18 = vadd.f32 %v391_v22, %v281_v62  ;;  %v511_v6 = vpop.permute.xlu2 %510 }
 0x187   :  { %v3104_v9 = vsub.f32 %v2838_v41, %v511_v6  ;;  %v3107_v22 = vsub.f32 %v2874_v49, %v511_v6 }
 0x188   :  { %v426_v63 = vmul.f32 0.0051020407, %v392_v18  ;;  %v3111_v18 = vpop.permute.xlu1 %500 }
 0x189   :  { %4816 = vst [vmem:[#allocation27_spill] sm:$0xff] %v3104_v9  ;;  %v678_v62 = vmul.f32 %v3104_v9, %v3104_v9  ;;  %v677_v41 = vmul.f32 %v3107_v22, %v3107_v22 }
 0x18a   :  { %575 = vperm.xlu0 %2539, %v426_v63   ;;  %4817 = vst [vmem:[#allocation28_spill] sm:$0xff] %v3107_v22 }
 0x18b   :  { %v771_v55 = vsel %vm79_vm1, %v678_v62, 0.0 }
 0x18d   :  { %v284_v33 = vpop.f32.mrf.mxu0 }
 0x18e   :  { %v395_v58 = vadd.f32 %v394_v53, %v284_v33 }
 0x190   :  { %v427_v3 = vmul.f32 0.0051020407, %v395_v58 }
 0x192   :  { %580 = vperm.xlu0 %2539, %v427_v3  }
 0x194   :  { %v526_v63 = vpop.permute.xlu2 %525 }
 0x195   :  { %v3122_v58 = vsub.f32 %v2847_v43, %v526_v63  ;;  %v3131_v23 = vsub.f32 %v2922_v4, %v526_v63 }
 0x197   :  { %v684_v9 = vmul.f32 %v3122_v58, %v3122_v58 }
 0x199   :  { %v783_v4 = vsel %vm79_vm1, %v684_v9, 0.0 }
 0x19c   :  { %v516_v43 = vpop.permute.xlu1 %515 }
 0x1a4   :  { %v521_v53 = vpop.permute.xlu0 %520 }
 0x1a5   :  { %v3114_v33 = vsub.f32 %v2906_v61, %v521_v53  ;;  %v3117_v3 = vsub.f32 %v2822_v38, %v521_v53  ;;  %v772_v53 = vadd.f32 %v771_v55, %v677_v41  ;;  %v3145_v55 = vsub.f32 %v2890_v54, %v516_v43 }
 0x1a7   :  { %4818 = vst [vmem:[#allocation29_spill] sm:$0xff] %v3114_v33  ;;  %v682_v49 = vmul.f32 %v3117_v3, %v3117_v3  ;;  %v681_v6 = vmul.f32 %v3114_v33, %v3114_v33  ;;  %v3138_v33 = vsub.f32 %v2799_v34, %v516_v43  ;;  %v679_v9 = vmul.f32 %v3145_v55, %v3145_v55 }
 0x1a8   :  { %4819 = vst [vmem:[#allocation30_spill] sm:$0xff] %v3117_v3  ;;  %v683_v3 = vmul.f32 %v3131_v23, %v3131_v23 }
 0x1a9   :  { %v779_v61 = vsel %vm79_vm1, %v682_v49, 0.0  ;;  %v680_v49 = vmul.f32 %v3138_v33, %v3138_v33 }
 0x1aa   :  { %v780_v38 = vadd.f32 %v779_v61, %v681_v6  ;;  %v784_v41 = vadd.f32 %v783_v4, %v683_v3 }
 0x1ac   :  { %v541_v22 = vpop.permute.xlu2 %540  ;;  %781 = vadd.xlane.f32.xlu2 %v780_v38  ;;  %773 = vadd.xlane.f32.xlu1 %v772_v53 }
 0x1ad   :  { %v3141_v62 = vsub.f32 %v2899_v59, %v541_v22  ;;  %v3148_v63 = vsub.f32 %v2970_v51, %v541_v22  ;;  %v775_v22 = vsel %vm79_vm1, %v680_v49, 0.0 }
 0x1ae   :  { %v776_v38 = vadd.f32 %v775_v22, %v679_v9 }
 0x1af   :  { %v690_v6 = vmul.f32 %v3141_v62, %v3141_v62  ;;  %v689_v59 = vmul.f32 %v3148_v63, %v3148_v63 }
 0x1b1   :  { %v795_v51 = vsel %vm79_vm1, %v690_v6, 0.0 }
 0x1b2   :  { %v796_v61 = vadd.f32 %v795_v51, %v689_v59 }
 0x1b4   :  { %v531_v34 = vpop.permute.xlu1 %530  ;;  %785 = vadd.xlane.f32.xlu1 %v784_v41 }
 0x1b5   :  { %v3159_v54 = vsub.f32 %v2865_v47, %v531_v34  ;;  %v3164_v3 = vsub.f32 %v2938_v13, %v531_v34 }
 0x1b7   :  { %v686_v53 = vmul.f32 %v3159_v54, %v3159_v54  ;;  %v685_v41 = vmul.f32 %v3164_v3, %v3164_v3 }
 0x1b9   :  { %v787_v6 = vsel %vm79_vm1, %v686_v53, 0.0 }
 0x1ba   :  { %v788_v9 = vadd.f32 %v787_v6, %v685_v41 }
 0x1bc   :  { %v536_v43 = vpop.permute.xlu0 %535  ;;  %797 = vadd.xlane.f32.xlu1 %v796_v61  ;;  %777 = vadd.xlane.f32.xlu0 %v776_v38 }
 0x1bd   :  { %v3169_v4 = vsub.f32 %v2954_v30, %v536_v43  ;;  %v3172_v47 = vsub.f32 %v2883_v52, %v536_v43 }
 0x1bf   :  { %v688_v13 = vmul.f32 %v3172_v47, %v3172_v47  ;;  %v687_v49 = vmul.f32 %v3169_v4, %v3169_v4 }
 0x1c1   :  { %v791_v34 = vsel %vm79_vm1, %v688_v13, 0.0 }
 0x1c2   :  { %v792_v59 = vadd.f32 %v791_v34, %v687_v49 }
 0x1c4   :  { %v556_v30 = vpop.permute.xlu2 %555  ;;  %793 = vadd.xlane.f32.xlu2 %v792_v59  ;;  %789 = vadd.xlane.f32.xlu0 %v788_v9 }
 0x1c5   :  { %v3183_v52 = vsub.f32 %v3009_v16, %v556_v30  ;;  %v3186_v51 = vsub.f32 %v2947_v24, %v556_v30 }
 0x1c7   :  { %v696_v22 = vmul.f32 %v3186_v51, %v3186_v51  ;;  %v695_v61 = vmul.f32 %v3183_v52, %v3183_v52 }
 0x1c9   :  { %v807_v38 = vsel %vm79_vm1, %v696_v22, 0.0 }
 0x1ca   :  { %v808_v53 = vadd.f32 %v807_v38, %v695_v61 }
 0x1cc   :  { %v546_v43 = vpop.permute.xlu1 %545  ;;  %v561_v41 = vpop.permute.xlu2 %560  ;;  %809 = vadd.xlane.f32.xlu1 %v808_v53 }
 0x1cd   :  { %v3194_v13 = vsub.f32 %v2983_v60, %v546_v43  ;;  %v3197_v16 = vsub.f32 %v2915_v2, %v546_v43  ;;  %v3202_v49 = vsub.f32 %v2963_v46, %v561_v41  ;;  %v3208_v59 = vsub.f32 %v3022_v42, %v561_v41 }
 0x1cf   :  { %v692_v24 = vmul.f32 %v3197_v16, %v3197_v16  ;;  %v691_v6 = vmul.f32 %v3194_v13, %v3194_v13  ;;  %v698_v60 = vmul.f32 %v3202_v49, %v3202_v49  ;;  %v697_v22 = vmul.f32 %v3208_v59, %v3208_v59 }
 0x1d1   :  { %v799_v34 = vsel %vm79_vm1, %v692_v24, 0.0  ;;  %v811_v38 = vsel %vm79_vm1, %v698_v60, 0.0 }
 0x1d2   :  { %v800_v9 = vadd.f32 %v799_v34, %v691_v6  ;;  %v812_v41 = vadd.f32 %v811_v38, %v697_v22  ;;  %v1500_v6 = vld [vmem:[%s4729_s3 + $0x80] sm:$0xff] }
 0x1d4   :  { %v551_v2 = vpop.permute.xlu0 %550  ;;  %801 = vadd.xlane.f32.xlu0 %v800_v9 }
 0x1d5   :  { %v3213_v30 = vsub.f32 %v2996_v5, %v551_v2  ;;  %v3216_v46 = vsub.f32 %v2931_v10, %v551_v2 }
 0x1d7   :  { %v694_v61 = vmul.f32 %v3216_v46, %v3216_v46  ;;  %v693_v42 = vmul.f32 %v3213_v30, %v3213_v30 }
 0x1d9   :  { %v803_v53 = vsel %vm79_vm1, %v694_v61, 0.0 }
 0x1da   :  { %v804_v43 = vadd.f32 %v803_v53, %v693_v42 }
 0x1dc   :  { %805 = vadd.xlane.f32.xlu2 %v804_v43  ;;  %813 = vadd.xlane.f32.xlu0 %v812_v41 }
 0x1ec   :  { %v566_v5 = vpop.permute.xlu1 %565 }
 0x1ed   :  { %v3227_v10 = vsub.f32 %v3028_v56, %v566_v5  ;;  %v3230_v24 = vsub.f32 %v2976_v57, %v566_v5 }
 0x1ef   :  { %v700_v34 = vmul.f32 %v3230_v24, %v3230_v24  ;;  %v699_v9 = vmul.f32 %v3227_v10, %v3227_v10 }
 0x1f0   :  { %1597 = vperm.xlu0 %2539, %v1500_v6  }
 0x1f1   :  { %v815_v60 = vsel %vm79_vm1, %v700_v34, 0.0 }
 0x1f2   :  { %v816_v2 = vadd.f32 %v815_v60, %v699_v9  ;;  %v3264_v9 = vsub.f32 %v2774_v29, %v3101_v28  ;;  %v1501_v60 = vld [vmem:[%s4729_s3 + $0x88] sm:$0xff] }
 0x1f4   :  { %817 = vadd.xlane.f32.xlu2 %v816_v2  ;;  %v571_v56 = vpop.permute.xlu1 %570  ;;  %4820 = vst [vmem:[#allocation31_spill] sm:$0xff] %v3264_v9 }
 0x1f5   :  { %v3241_v22 = vsub.f32 %v3034_v0, %v571_v56  ;;  %v3244_v57 = vsub.f32 %v2989_v1, %v571_v56  ;;  %v3279_v56 = vsub.f32 %v2730_v20, %v3089_v21  ;;  %v3294_v20 = vsub.f32 %v2700_v14, %v3077_v39 }
 0x1f6   :  { %v3307_v14 = vsub.f32 %v2673_v8, %v3065_v45 }
 0x1f7   :  { %v702_v61 = vmul.f32 %v3244_v57, %v3244_v57  ;;  %v701_v42 = vmul.f32 %v3241_v22, %v3241_v22  ;;  %4822 = vst [vmem:[#allocation33_spill] sm:$0xff] %v3279_v56 }
 0x1f8   :  { %4824 = vst [vmem:[#allocation35_spill] sm:$0xff] %v3294_v20 }
 0x1f9   :  { %v819_v38 = vsel %vm79_vm1, %v702_v61, 0.0  ;;  %4826 = vst [vmem:[#allocation37_spill] sm:$0xff] %v3307_v14 }
 0x1fa   :  { %v820_v53 = vadd.f32 %v819_v38, %v701_v42  ;;  %v666_v42 = vmul.f32 %v3279_v56, %v3279_v56 }
 0x1fc   :  { %821 = vadd.xlane.f32.xlu2 %v820_v53  ;;  %v576_v43 = vpop.permute.xlu0 %575 }
 0x1fd   :  { %v3252_v41 = vsub.f32 %v3040_v15, %v576_v43  ;;  %v3255_v0 = vsub.f32 %v3002_v12, %v576_v43  ;;  %v3268_v15 = vsub.f32 %v2808_v35, %v3101_v28  ;;  %v672_v12 = vmul.f32 %v3264_v9, %v3264_v9 }
 0x1fe   :  { %v305_v35 = vadd.f32 %v2833_v40, %v2869_v48  ;;  %v3286_v28 = vsub.f32 %v2753_v25, %v3089_v21  ;;  %v747_v40 = vsel %vm79_vm1, %v666_v42, 0.0  ;;  %v3299_v25 = vsub.f32 %v2714_v17, %v3077_v39 }
 0x1ff   :  { %v704_v1 = vmul.f32 %v3255_v0, %v3255_v0  ;;  %v703_v5 = vmul.f32 %v3252_v41, %v3252_v41  ;;  %4821 = vst [vmem:[#allocation32_spill] sm:$0xff] %v3268_v15  ;;  %v671_v2 = vmul.f32 %v3268_v15, %v3268_v15  ;;  %v759_v29 = vsel %vm79_vm1, %v672_v12, 0.0 }
 0x200   :  { %4823 = vst [vmem:[#allocation34_spill] sm:$0xff] %v3286_v28  ;;  %v397_v38 = vmul.f32 0.0051020407, %v305_v35  ;;  %v665_v53 = vmul.f32 %v3286_v28, %v3286_v28  ;;  %v660_v21 = vmul.f32 %v3294_v20, %v3294_v20  ;;  %v3312_v17 = vsub.f32 %v2687_v11, %v3065_v45  ;;  %v2605_v28 = vld [vmem:[%s4728_s0 + $0x80] sm:$0xff] }
 0x201   :  { %v823_v6 = vsel %vm79_vm1, %v704_v1, 0.0  ;;  %v760_v61 = vadd.f32 %v759_v29, %v671_v2  ;;  %4825 = vst [vmem:[#allocation36_spill] sm:$0xff] %v3299_v25  ;;  %v3330_v35 = vsub.f32 %v2813_v36, %v3099_v19 }
 0x202   :  { %v824_v34 = vadd.f32 %v823_v6, %v703_v5  ;;  %v748_v48 = vadd.f32 %v747_v40, %v665_v53  ;;  %v659_v5 = vmul.f32 %v3299_v25, %v3299_v25  ;;  %v735_v6 = vsel %vm79_vm1, %v660_v21, 0.0  ;;  %4827 = vst [vmem:[#allocation38_spill] sm:$0xff] %v3312_v17 }
 0x203   :  { %v653_v8 = vmul.f32 %v3312_v17, %v3312_v17  ;;  %v676_v36 = vmul.f32 %v3330_v35, %v3330_v35 }
 0x204   :  { %825 = vadd.xlane.f32.xlu1 %v824_v34  ;;  %v581_v34 = vpop.permute.xlu0 %580  ;;  %v736_v12 = vadd.f32 %v735_v6, %v659_v5 }
 0x205   :  { %v3322_v2 = vsub.f32 %v3046_v50, %v581_v34  ;;  %v3325_v29 = vsub.f32 %v3015_v27, %v581_v34 }
 0x207   :  { %v706_v53 = vmul.f32 %v3325_v29, %v3325_v29 }
 0x209   :  { %v829_v5 = vsel %vm828_vm2, %v706_v53, 0.0 }
 0x214   :  { %1602 = vperm.xlu2 %2537, %v1501_v60   ;;  %v654_v60 = vmul.f32 %v3307_v14, %v3307_v14  ;;  %v4837_v14 = vld [vmem:[#allocation3_spill] sm:$0xff] }
 0x216   :  { %v723_v11 = vsel %vm79_vm1, %v654_v60, 0.0  ;;  %v3362_v60 = vsub.f32 %v2790_v32, %v3111_v18 }
 0x217   :  { %v724_v42 = vadd.f32 %v723_v11, %v653_v8 }
 0x218   :  { %4829 = vst [vmem:[#allocation40_spill] sm:$0xff] %v3362_v60 }
 0x21a   :  { %761 = vadd.xlane.f32.xlu0 %v760_v61 }
 0x21d   :  { %430 = vperm.xlu1 %2538, %v397_v38   ;;  %v705_v38 = vmul.f32 %v3322_v2, %v3322_v2 }
 0x21f   :  { %v774_v43 = vpop.xlane.xlu1 %773  ;;  %v782_v50 = vpop.xlane.xlu2 %781 }
 0x220   :  { %v849_v1 = vmul.f32 0.0051020407, %v774_v43  ;;  %v851_v21 = vmul.f32 0.0051020407, %v782_v50  ;;  %v674_v50 = vmul.f32 %v3362_v60, %v3362_v60 }
 0x222   :  { %749 = vadd.xlane.f32.xlu0 %v748_v48  ;;  %v3314_v39 = vadd.f32 1e-05, %v849_v1  ;;  %v3342_v48 = vsub.f32 %v2856_v44, %v3099_v19  ;;  %v827_v1 = vsel %vm173_vm0, %v705_v38, 0.0  ;;  %v3355_v44 = vsub.f32 %v2758_v26, %v3097_v7  ;;  %v4831_v38 = vld [vmem:[#allocation6_spill] sm:$0xff] }
 0x223   :  { %v3357_v19 = vadd.f32 1e-05, %v851_v21  ;;  %v830_v34 = vadd.f32 %v829_v5, %v827_v1  ;;  %v3375_v53 = vsub.f32 %v4831_v38, %v3111_v18  ;;  %v4835_v18 = vld [vmem:[#allocation4_spill] sm:$0xff]  ;;  %v763_v38 = vsel %vm79_vm1, %v674_v50, 0.0 }
 0x224   :  { %2540 = vrsqrt.f32 %v3314_v39  ;;  %v675_v6 = vmul.f32 %v3342_v48, %v3342_v48  ;;  %4828 = vst [vmem:[#allocation39_spill] sm:$0xff] %v3355_v44  ;;  %v3390_v5 = vsub.f32 %v4835_v18, %v3093_v37  ;;  %vm1092_vm4 = vweird.f32 %v3314_v39 }
 0x225   :  { %vm1112_vm10 = vweird.f32 %v3357_v19 }
 0x227   :  { %v786_v11 = vpop.xlane.xlu1 %785 }
 0x228   :  { %v852_v32 = vmul.f32 0.0051020407, %v786_v11 }
 0x22a   :  { %737 = vadd.xlane.f32.xlu0 %v736_v12  ;;  %v3336_v40 = vpop.eup %2540  ;;  %v767_v12 = vsel %vm79_vm1, %v676_v36, 0.0 }
 0x22b   :  { %v1087_v43 = vmul.f32 %v3336_v40, %v3314_v39  ;;  %v768_v26 = vadd.f32 %v767_v12, %v675_v6  ;;  %v3392_v6 = vadd.f32 1e-05, %v852_v32  ;;  %v673_v12 = vmul.f32 %v3375_v53, %v3375_v53  ;;  %v880_v39 = vld [vmem:[%s4730_s2 + $0x80] sm:$0xff] }
 0x22c   :  { %vm1093_vm3 = vweird.f32 %v3336_v40 }
 0x22d   :  { %v1088_v8 = vmul.f32 %v3336_v40, %v1087_v43  ;;  %vm3433_vm5 = vmor %vm1092_vm4, %vm1093_vm3  ;;  %vm1122_vm13 = vweird.f32 %v3392_v6 }
 0x22f   :  { %v778_v45 = vpop.xlane.xlu0 %777  ;;  %v1089_v36 = vmul.f32 0.5, %v1088_v8 }
 0x230   :  { %v850_v61 = vmul.f32 0.0051020407, %v778_v45 }
 0x231   :  { %v1090_v8 = vsub.f32 1.5, %v1089_v36  ;;  %v668_v36 = vmul.f32 %v3390_v5, %v3390_v5 }
 0x232   :  { %v3338_v27 = vadd.f32 1e-05, %v850_v61  ;;  %725 = vadd.xlane.f32.xlu0 %v724_v42  ;;  %v3369_v61 = vsub.f32 %v2785_v31, %v3097_v7  ;;  %v670_v42 = vmul.f32 %v3355_v44, %v3355_v44  ;;  %v4832_v31 = vld [vmem:[#allocation23_spill] sm:$0xff]  ;;  %v4833_v7 = vld [vmem:[#allocation2_spill] sm:$0xff] }
 0x233   :  { %v3384_v43 = vsub.f32 %v4833_v7, %v4832_v31  ;;  %4836 = vst [vmem:[#allocation23_spill] sm:$0xff] %v3390_v5  ;;  %v3403_v17 = vsub.f32 %v4837_v14, %v4832_v31  ;;  %v1091_v31 = vmul.f32 %v3336_v40, %v1090_v8 }
 0x234   :  { %2542 = vrsqrt.f32 %v3338_v27  ;;  %4830 = vst [vmem:[#allocation41_spill] sm:$0xff] %v3369_v61  ;;  %v669_v1 = vmul.f32 %v3369_v61, %v3369_v61  ;;  %vm1102_vm7 = vweird.f32 %v3338_v27 }
 0x235   :  { %2544 = vrsqrt.f32 %v3357_v19  ;;  %4834 = vst [vmem:[#allocation6_spill] sm:$0xff] %v3384_v43  ;;  %v664_v32 = vmul.f32 %v3384_v43, %v3384_v43 }
 0x236   :  { %4838 = vst [vmem:[#allocation2_spill] sm:$0xff] %v3403_v17  ;;  %2546 = vrsqrt.f32 %v3392_v6 }
 0x237   :  { %v794_v56 = vpop.xlane.xlu2 %793 }
 0x238   :  { %v854_v8 = vmul.f32 0.0051020407, %v794_v56 }
 0x23a   :  { %831 = vadd.xlane.f32.xlu0 %v830_v34  ;;  %v3365_v45 = vpop.eup %2542  ;;  %v755_v34 = vsel %vm79_vm1, %v670_v42, 0.0  ;;  %v4839_v42 = vld [vmem:[#allocation5_spill] sm:$0xff] }
 0x23b   :  { %v1097_v21 = vmul.f32 %v3365_v45, %v3338_v27  ;;  %v3399_v7 = vpop.eup %2544  ;;  %v3409_v18 = vsub.f32 %v4839_v42, %v3093_v37  ;;  %v756_v20 = vadd.f32 %v755_v34, %v669_v1  ;;  %v2602_v37 = vld [vmem:[%s4728_s0 + $0x68] sm:$0xff]  ;;  %v4841_v1 = vld [vmem:[#allocation18_spill] sm:$0xff]  ;;  %v743_v42 = vsel %vm79_vm1, %v664_v32, 0.0 }
 0x23c   :  { %v1107_v25 = vmul.f32 %v3399_v7, %v3357_v19  ;;  %v3422_v34 = vsub.f32 %v2602_v37, %v4841_v1  ;;  %v2604_v32 = vld [vmem:[%s4728_s0 + $0x60] sm:$0xff]  ;;  %vm1103_vm6 = vweird.f32 %v3365_v45  ;;  %v881_v27 = vld [vmem:[%s4730_s2 + $0x88] sm:$0xff]  ;;  %vm1113_vm9 = vweird.f32 %v3399_v7  ;;  %v882_v19 = vld [vmem:[%s4730_s2 + $0x90] sm:$0xff] }
 0x23d   :  { %769 = vadd.xlane.f32.xlu2 %v768_v26  ;;  %v1098_v11 = vmul.f32 %v3365_v45, %v1097_v21  ;;  %v790_v26 = vpop.xlane.xlu0 %789  ;;  %4840 = vst [vmem:[#allocation4_spill] sm:$0xff] %v3409_v18  ;;  %v764_v21 = vadd.f32 %v763_v38, %v673_v12  ;;  %v2603_v12 = vld [vmem:[%s4728_s0 + $0x88] sm:$0xff]  ;;  %v667_v37 = vmul.f32 %v3409_v18, %v3409_v18  ;;  %vm3488_vm8 = vmor %vm1102_vm7, %vm1103_vm6 }
 0x23e   :  { %v853_v50 = vmul.f32 0.0051020407, %v790_v26  ;;  %4842 = vst [vmem:[#allocation3_spill] sm:$0xff] %v3422_v34  ;;  %v4843_v26 = vld [vmem:[#allocation21_spill] sm:$0xff]  ;;  %vm3537_vm11 = vmor %vm1112_vm10, %vm1113_vm9 }
 0x23f   :  { %v1099_v14 = vmul.f32 0.5, %v1098_v11  ;;  %v3428_v38 = vsub.f32 %v2603_v12, %v4843_v26  ;;  %v1108_v12 = vmul.f32 %v3399_v7, %v1107_v25  ;;  %v3456_v25 = vsub.f32 %v2604_v32, %v4841_v1 }
 0x240   :  { %v3437_v11 = vadd.f32 1e-05, %v853_v50  ;;  %v751_v50 = vsel %vm79_vm1, %v668_v36, 0.0 }
 0x241   :  { %4844 = vst [vmem:[#allocation5_spill] sm:$0xff] %v3428_v38  ;;  %v1100_v43 = vsub.f32 1.5, %v1099_v14  ;;  %v658_v14 = vmul.f32 %v3422_v34, %v3422_v34  ;;  %v662_v36 = vmul.f32 %v3428_v38, %v3428_v38  ;;  %v752_v1 = vadd.f32 %v751_v50, %v667_v37 }
 0x242   :  { %4847 = vst [vmem:[#allocation18_spill] sm:$0xff] %v3456_v25  ;;  %2548 = vrsqrt.f32 %v3437_v11  ;;  %v1109_v32 = vmul.f32 0.5, %v1108_v12  ;;  %v3492_v12 = vadd.f32 1e-05, %v854_v8  ;;  %vm1132_vm3 = vweird.f32 %v3437_v11 }
 0x243   :  { %v1101_v18 = vmul.f32 %v3365_v45, %v1100_v43  ;;  %v657_v43 = vmul.f32 %v3456_v25, %v3456_v25  ;;  %v739_v8 = vsel %vm79_vm1, %v662_v36, 0.0  ;;  %v2609_v25 = vld [vmem:[%s4728_s0 + $0x50] sm:$0xff] }
 0x244   :  { %v1110_v50 = vsub.f32 1.5, %v1109_v32  ;;  %2550 = vrsqrt.f32 %v3492_v12  ;;  %vm1142_vm6 = vweird.f32 %v3492_v12 }
 0x245   :  { %757 = vadd.xlane.f32.xlu2 %v756_v20  ;;  %v663_v20 = vmul.f32 %v3403_v17, %v3403_v17  ;;  %v3450_v17 = vpop.eup %2546 }
 0x246   :  { %v1117_v34 = vmul.f32 %v3450_v17, %v3392_v6  ;;  %vm1123_vm12 = vweird.f32 %v3450_v17 }
 0x247   :  { %765 = vadd.xlane.f32.xlu1 %v764_v21  ;;  %v1095_v21 = vsel %vm3433_vm5, %v3336_v40, %v1091_v31  ;;  %v3464_v40 = vsub.f32 %v2605_v28, %v4843_v26  ;;  %v744_v31 = vadd.f32 %v743_v42, %v663_v20  ;;  %v2606_v28 = vld [vmem:[%s4728_s0 + $0x38] sm:$0xff]  ;;  %v4851_v42 = vld [vmem:[#allocation16_spill] sm:$0xff]  ;;  %vm1124_vm14 = vmor %vm1122_vm13, %vm1123_vm12 }
 0x248   :  { %v1252_v5 = vmul.f32 %v1095_v21, %v880_v39  ;;  %v4849_v26 = vld [vmem:[#allocation13_spill] sm:$0xff]  ;;  %v731_v39 = vsel %vm79_vm1, %v658_v14, 0.0  ;;  %v2608_v14 = vld [vmem:[%s4728_s0 + $0x30] sm:$0xff] }
 0x249   :  { %4848 = vst [vmem:[#allocation21_spill] sm:$0xff] %v3464_v40  ;;  %v3477_v56 = vsub.f32 %v2606_v28, %v4849_v26  ;;  %v2607_v20 = vld [vmem:[%s4728_s0 + $0x58] sm:$0xff]  ;;  %v661_v21 = vmul.f32 %v3464_v40, %v3464_v40  ;;  %v798_v28 = vpop.xlane.xlu1 %797  ;;  %v3511_v32 = vsub.f32 %v2608_v14, %v4849_v26  ;;  %v732_v36 = vadd.f32 %v731_v39, %v657_v43 }
 0x24a   :  { %v3483_v37 = vsub.f32 %v2607_v20, %v4851_v42  ;;  %v3505_v20 = vpop.eup %2548  ;;  %v1111_v40 = vmul.f32 %v3399_v7, %v1110_v50 }
 0x24b   :  { %4850 = vst [vmem:[#allocation13_spill] sm:$0xff] %v3477_v56  ;;  %v740_v26 = vadd.f32 %v739_v8, %v661_v21  ;;  %v651_v39 = vmul.f32 %v3511_v32, %v3511_v32  ;;  %vm1133_vm15 = vweird.f32 %v3505_v20 }
 0x24c   :  { %4852 = vst [vmem:[#allocation16_spill] sm:$0xff] %v3483_v37  ;;  %v1115_v8 = vsel %vm3537_vm11, %v3399_v7, %v1111_v40  ;;  %vm1134_vm4 = vmor %vm1132_vm3, %vm1133_vm15 }
 0x24d   :  { %745 = vadd.xlane.f32.xlu2 %v744_v31  ;;  %v1118_v31 = vmul.f32 %v3450_v17, %v1117_v34  ;;  %4855 = vst [vmem:[#allocation42_spill] sm:$0xff] %v3511_v32  ;;  %v652_v34 = vmul.f32 %v3477_v56, %v3477_v56  ;;  %v1127_v56 = vmul.f32 %v3505_v20, %v3437_v11 }
 0x24e   :  { %1349 = vperm.xlu0 %2539, %v1252_v5   ;;  %v855_v5 = vmul.f32 0.0051020407, %v798_v28  ;;  %v1254_v21 = vmul.f32 %v1115_v8, %v882_v19 }
 0x24f   :  { %753 = vadd.xlane.f32.xlu1 %v752_v1  ;;  %v1105_v1 = vsel %vm3488_vm8, %v3365_v45, %v1101_v18  ;;  %v3519_v45 = vsub.f32 %v2609_v25, %v4851_v42  ;;  %v656_v18 = vmul.f32 %v3483_v37, %v3483_v37  ;;  %v1119_v14 = vmul.f32 0.5, %v1118_v31  ;;  %v2610_v25 = vld [vmem:[%s4728_s0 + $0x28] sm:$0xff] }
 0x250   :  { %v1253_v38 = vmul.f32 %v1105_v1, %v881_v27  ;;  %v4857_v42 = vld [vmem:[#allocation11_spill] sm:$0xff]  ;;  %v3541_v31 = vadd.f32 1e-05, %v855_v5  ;;  %v1128_v27 = vmul.f32 %v3505_v20, %v1127_v56  ;;  %v802_v1 = vpop.xlane.xlu0 %801  ;;  %v3554_v5 = vpop.eup %2550 }
 0x251   :  { %4856 = vst [vmem:[#allocation43_spill] sm:$0xff] %v3519_v45  ;;  %v3532_v43 = vsub.f32 %v2610_v25, %v4857_v42  ;;  %v655_v50 = vmul.f32 %v3519_v45, %v3519_v45  ;;  %v1120_v28 = vsub.f32 1.5, %v1119_v14  ;;  %v856_v25 = vmul.f32 0.0051020407, %v802_v1  ;;  %v806_v1 = vpop.xlane.xlu2 %805 }
 0x252   :  { %2552 = vrsqrt.f32 %v3541_v31  ;;  %v1137_v40 = vmul.f32 %v3554_v5, %v3492_v12  ;;  %v857_v8 = vmul.f32 0.0051020407, %v806_v1  ;;  %vm1143_vm5 = vweird.f32 %v3554_v5 }
 0x253   :  { %4858 = vst [vmem:[#allocation11_spill] sm:$0xff] %v3532_v43  ;;  %v650_v56 = vmul.f32 %v3532_v43, %v3532_v43  ;;  %v1121_v32 = vmul.f32 %v3450_v17, %v1120_v28  ;;  %vm1144_vm7 = vmor %vm1142_vm6, %vm1143_vm5  ;;  %vm1152_vm9 = vweird.f32 %v3541_v31  ;;  %v4865_v43 = vld [vmem:[#allocation27_spill] sm:$0xff] }
 0x255   :  { %733 = vadd.xlane.f32.xlu2 %v732_v36  ;;  %v727_v36 = vsel %vm79_vm1, %v656_v18, 0.0  ;;  %v1129_v18 = vmul.f32 0.5, %v1128_v27  ;;  %v883_v27 = vld [vmem:[%s4730_s2 + $0x98] sm:$0xff]  ;;  %v1125_v28 = vsel %vm1124_vm14, %v3450_v17, %v1121_v32  ;;  %v715_v19 = vsel %vm79_vm1, %v650_v56, 0.0 }
 0x256   :  { %1354 = vperm.xlu0 %2539, %v1253_v38   ;;  %v719_v38 = vsel %vm79_vm1, %v652_v34, 0.0  ;;  %v2611_v34 = vld [vmem:[%s4728_s0 + $0x20] sm:$0xff]  ;;  %v728_v7 = vadd.f32 %v727_v36, %v655_v50  ;;  %v1255_v36 = vmul.f32 %v1125_v28, %v883_v27  ;;  %v3585_v17 = vadd.f32 1e-05, %v857_v8 }
 0x257   :  { %741 = vadd.xlane.f32.xlu1 %v740_v26  ;;  %v3560_v26 = vsub.f32 %v2611_v34, %v4857_v42  ;;  %v720_v14 = vadd.f32 %v719_v38, %v651_v39  ;;  %v3570_v42 = vadd.f32 1e-05, %v856_v25  ;;  %v1138_v38 = vmul.f32 %v3554_v5, %v1137_v40  ;;  %v884_v40 = vld [vmem:[%s4730_s2 + $0xa0] sm:$0xff] }
 0x258   :  { %v1130_v50 = vsub.f32 1.5, %v1129_v18  ;;  %v2553_v6 = vpop.eup %2552  ;;  %v814_v8 = vpop.xlane.xlu0 %813  ;;  %vm1172_vm15 = vweird.f32 %v3585_v17 }
 0x259   :  { %4861 = vst [vmem:[#allocation44_spill] sm:$0xff] %v3560_v26  ;;  %v649_v39 = vmul.f32 %v3560_v26, %v3560_v26  ;;  %2554 = vrsqrt.f32 %v3570_v42  ;;  %v1139_v25 = vmul.f32 0.5, %v1138_v38  ;;  %vm1153_vm8 = vweird.f32 %v2553_v6 }
 0x25a   :  { %2556 = vrsqrt.f32 %v3585_v17  ;;  %vm1154_vm10 = vmor %vm1152_vm9, %vm1153_vm8  ;;  %vm1162_vm12 = vweird.f32 %v3570_v42 }
 0x25b   :  { %v716_v34 = vadd.f32 %v715_v19, %v649_v39  ;;  %v1140_v56 = vsub.f32 1.5, %v1139_v25  ;;  %v859_v25 = vmul.f32 0.0051020407, %v814_v8 }
 0x25d   :  { %721 = vadd.xlane.f32.xlu2 %v720_v14  ;;  %v1147_v14 = vmul.f32 %v2553_v6, %v3541_v31  ;;  %v1141_v27 = vmul.f32 %v3554_v5, %v1140_v56 }
 0x25e   :  { %1359 = vperm.xlu0 %2539, %v1254_v21   ;;  %v1131_v21 = vmul.f32 %v3505_v20, %v1130_v50 }
 0x25f   :  { %729 = vadd.xlane.f32.xlu1 %v728_v7  ;;  %v1148_v32 = vmul.f32 %v2553_v6, %v1147_v14  ;;  %v810_v7 = vpop.xlane.xlu1 %809  ;;  %v2555_v39 = vpop.eup %2554 }
 0x260   :  { %v1135_v18 = vsel %vm1134_vm4, %v3505_v20, %v1131_v21  ;;  %v858_v38 = vmul.f32 0.0051020407, %v810_v7  ;;  %v1157_v11 = vmul.f32 %v2555_v39, %v3570_v42  ;;  %v2557_v14 = vpop.eup %2556  ;;  %vm1163_vm11 = vweird.f32 %v2555_v39 }
 0x261   :  { %v1256_v50 = vmul.f32 %v1135_v18, %v884_v40  ;;  %v1149_v1 = vmul.f32 0.5, %v1148_v32  ;;  %v1167_v12 = vmul.f32 %v2557_v14, %v3585_v17  ;;  %v3605_v40 = vadd.f32 1e-05, %v859_v25  ;;  %vm1164_vm13 = vmor %vm1162_vm12, %vm1163_vm11  ;;  %v887_v25 = vld [vmem:[%s4730_s2 + $0xb8] sm:$0xff] }
 0x262   :  { %v3596_v28 = vadd.f32 1e-05, %v858_v38  ;;  %v1158_v20 = vmul.f32 %v2555_v39, %v1157_v11  ;;  %vm1173_vm14 = vweird.f32 %v2557_v14 }
 0x263   :  { %v1150_v19 = vsub.f32 1.5, %v1149_v1  ;;  %v1168_v38 = vmul.f32 %v2557_v14, %v1167_v12  ;;  %vm1174_vm3 = vmor %vm1172_vm15, %vm1173_vm14  ;;  %vm1192_vm8 = vweird.f32 %v3605_v40 }
 0x264   :  { %2558 = vrsqrt.f32 %v3596_v28  ;;  %v1159_v32 = vmul.f32 0.5, %v1158_v20  ;;  %vm1182_vm5 = vweird.f32 %v3596_v28 }
 0x265   :  { %v1151_v56 = vmul.f32 %v2553_v6, %v1150_v19  ;;  %2560 = vrsqrt.f32 %v3605_v40  ;;  %v1169_v19 = vmul.f32 0.5, %v1168_v38 }
 0x266   :  { %1364 = vperm.xlu0 %2539, %v1255_v36   ;;  %v885_v36 = vld [vmem:[%s4730_s2 + $0xa8] sm:$0xff]  ;;  %v1160_v18 = vsub.f32 1.5, %v1159_v32 }
 0x267   :  { %717 = vadd.xlane.f32.xlu1 %v716_v34  ;;  %v1145_v34 = vsel %vm1144_vm7, %v3554_v5, %v1141_v27  ;;  %v818_v7 = vpop.xlane.xlu2 %817  ;;  %v886_v5 = vld [vmem:[%s4730_s2 + $0xb0] sm:$0xff] }
 0x268   :  { %v1257_v21 = vmul.f32 %v1145_v34, %v885_v36  ;;  %v860_v11 = vmul.f32 0.0051020407, %v818_v7  ;;  %v1161_v20 = vmul.f32 %v2555_v39, %v1160_v18  ;;  %v1170_v36 = vsub.f32 1.5, %v1169_v19  ;;  %v3624_v18 = vpop.permute.xlu0 %1597 }
 0x26a   :  { %v3610_v1 = vpop.eup %2558  ;;  %v3616_v8 = vadd.f32 1e-05, %v860_v11  ;;  %v1171_v38 = vmul.f32 %v2557_v14, %v1170_v36 }
 0x26b   :  { %v1177_v31 = vmul.f32 %v3610_v1, %v3596_v28  ;;  %v2561_v32 = vpop.eup %2560  ;;  %vm1183_vm4 = vweird.f32 %v3610_v1  ;;  %v889_v28 = vld [vmem:[%s4730_s2 + $0xc8] sm:$0xff] }
 0x26c   :  { %2562 = vrsqrt.f32 %v3616_v8  ;;  %v1187_v42 = vmul.f32 %v2561_v32, %v3605_v40  ;;  %vm1184_vm6 = vmor %vm1182_vm5, %vm1183_vm4  ;;  %vm1193_vm7 = vweird.f32 %v2561_v32  ;;  %vm1202_vm11 = vweird.f32 %v3616_v8 }
 0x26d   :  { %vm1194_vm9 = vmor %vm1192_vm8, %vm1193_vm7 }
 0x26e   :  { %1369 = vperm.xlu0 %2539, %v1256_v50   ;;  %v1155_v50 = vsel %vm1154_vm10, %v2553_v6, %v1151_v56  ;;  %v1178_v6 = vmul.f32 %v3610_v1, %v1177_v31  ;;  %v1188_v11 = vmul.f32 %v2561_v32, %v1187_v42  ;;  %v1175_v31 = vsel %vm1174_vm3, %v2557_v14, %v1171_v38 }
 0x26f   :  { %v1258_v27 = vmul.f32 %v1155_v50, %v886_v5  ;;  %v822_v34 = vpop.xlane.xlu2 %821 }
 0x270   :  { %v861_v12 = vmul.f32 0.0051020407, %v822_v34  ;;  %v1179_v7 = vmul.f32 0.5, %v1178_v6  ;;  %v1189_v36 = vmul.f32 0.5, %v1188_v11 }
 0x272   :  { %v3627_v50 = vadd.f32 1e-05, %v861_v12  ;;  %v2563_v19 = vpop.eup %2562  ;;  %v2612_v12 = vld [vmem:[%s4728_s0] sm:$0xff]  ;;  %v1190_v38 = vsub.f32 1.5, %v1189_v36 }
 0x273   :  { %v1197_v17 = vmul.f32 %v2563_v19, %v3616_v8  ;;  %vm1203_vm10 = vweird.f32 %v2563_v19 }
 0x274   :  { %2564 = vrsqrt.f32 %v3627_v50  ;;  %vm1204_vm12 = vmor %vm1202_vm11, %vm1203_vm10  ;;  %vm1212_vm14 = vweird.f32 %v3627_v50 }
 0x276   :  { %1374 = vperm.xlu0 %2539, %v1257_v21   ;;  %v1165_v21 = vsel %vm1164_vm13, %v2555_v39, %v1161_v20  ;;  %v1180_v39 = vsub.f32 1.5, %v1179_v7  ;;  %v2613_v7 = vld [vmem:[%s4728_s0 + $0x8] sm:$0xff] }
 0x277   :  { %v1259_v56 = vmul.f32 %v1165_v21, %v887_v25  ;;  %v826_v5 = vpop.xlane.xlu1 %825 }
 0x278   :  { %v862_v20 = vmul.f32 0.0051020407, %v826_v5  ;;  %v1181_v25 = vmul.f32 %v3610_v1, %v1180_v39  ;;  %v1198_v5 = vmul.f32 %v2563_v19, %v1197_v17 }
 0x27a   :  { %v3639_v14 = vadd.f32 1e-05, %v862_v20  ;;  %v1185_v39 = vsel %vm1184_vm6, %v3610_v1, %v1181_v25  ;;  %v2565_v11 = vpop.eup %2564  ;;  %v1199_v36 = vmul.f32 0.5, %v1198_v5  ;;  %v1191_v1 = vmul.f32 %v2561_v32, %v1190_v38 }
 0x27b   :  { %v1261_v20 = vmul.f32 %v1185_v39, %v889_v28  ;;  %v1207_v17 = vmul.f32 %v2565_v11, %v3627_v50  ;;  %v890_v28 = vld [vmem:[%s4730_s2 + $0xd0] sm:$0xff]  ;;  %vm1213_vm13 = vweird.f32 %v2565_v11 }
 0x27c   :  { %2566 = vrsqrt.f32 %v3639_v14  ;;  %v1200_v25 = vsub.f32 1.5, %v1199_v36  ;;  %v1195_v39 = vsel %vm1194_vm9, %v2561_v32, %v1191_v1  ;;  %vm1214_vm15 = vmor %vm1212_vm14, %vm1213_vm13  ;;  %vm1222_vm4 = vweird.f32 %v3639_v14 }
 0x27d   :  { %v1262_v5 = vmul.f32 %v1195_v39, %v890_v28 }
 0x27e   :  { %1379 = vperm.xlu0 %2539, %v1258_v27   ;;  %v888_v27 = vld [vmem:[%s4730_s2 + $0xc0] sm:$0xff]  ;;  %v1201_v38 = vmul.f32 %v2563_v19, %v1200_v25  ;;  %v3678_v25 = vpop.permute.xlu2 %1602 }
 0x27f   :  { %v1260_v6 = vmul.f32 %v1175_v31, %v888_v27 }
 0x280   :  { %v1205_v32 = vsel %vm1204_vm12, %v2563_v19, %v1201_v38  ;;  %v1499_v19 = vld [vmem:[%s4729_s3 + $0x78] sm:$0xff] }
 0x286   :  { %1384 = vperm.xlu0 %2539, %v1259_v56  }
 0x28d   :  { %v3635_v34 = vpop.xlane.xlu0 %761 }
 0x28e   :  { %1389 = vperm.xlu0 %2539, %v1260_v6  }
 0x28f   :  { %v431_v21 = vpop.permute.xlu1 %430 }
 0x290   :  { %v3644_v56 = vsub.f32 %v2612_v12, %v431_v21  ;;  %v3649_v42 = vsub.f32 %v2613_v7, %v431_v21  ;;  %v1208_v7 = vmul.f32 %v2565_v11, %v1207_v17 }
 0x292   :  { %4862 = vst [vmem:[#allocation45_spill] sm:$0xff] %v3644_v56  ;;  %v646_v27 = vmul.f32 %v3649_v42, %v3649_v42  ;;  %v645_v31 = vmul.f32 %v3644_v56, %v3644_v56 }
 0x293   :  { %4863 = vst [vmem:[#allocation46_spill] sm:$0xff] %v3649_v42  ;;  %v1209_v42 = vmul.f32 0.5, %v1208_v7 }
 0x294   :  { %v707_v6 = vsel %vm79_vm1, %v646_v27, 0.0  ;;  %v2567_v27 = vpop.eup %2566 }
 0x295   :  { %v3662_v21 = vpop.xlane.xlu0 %749  ;;  %v708_v12 = vadd.f32 %v707_v6, %v645_v31  ;;  %v1217_v56 = vmul.f32 %v2567_v27, %v3639_v14  ;;  %v1210_v40 = vsub.f32 1.5, %v1209_v42  ;;  %v891_v6 = vld [vmem:[%s4730_s2 + $0xd8] sm:$0xff]  ;;  %vm1223_vm3 = vweird.f32 %v2567_v27 }
 0x296   :  { %1394 = vperm.xlu0 %2539, %v1261_v20   ;;  %v1263_v36 = vmul.f32 %v1205_v32, %v891_v6  ;;  %vm1224_vm5 = vmor %vm1222_vm4, %vm1223_vm3 }
 0x297   :  { %709 = vadd.xlane.f32.xlu2 %v708_v12  ;;  %v1218_v20 = vmul.f32 %v2567_v27, %v1217_v56  ;;  %v1211_v1 = vmul.f32 %v2565_v11, %v1210_v40  ;;  %v892_v56 = vld [vmem:[%s4730_s2 + $0xe0] sm:$0xff] }
 0x299   :  { %v1219_v17 = vmul.f32 0.5, %v1218_v20  ;;  %v1215_v42 = vsel %vm1214_vm15, %v2565_v11, %v1211_v1  ;;  %v893_v11 = vld [vmem:[%s4730_s2 + $0xe8] sm:$0xff] }
 0x29a   :  { %v1264_v7 = vmul.f32 %v1215_v42, %v892_v56 }
 0x29b   :  { %v1220_v8 = vsub.f32 1.5, %v1219_v17 }
 0x29d   :  { %v3669_v31 = vpop.xlane.xlu0 %737  ;;  %v1221_v39 = vmul.f32 %v2567_v27, %v1220_v8 }
 0x29e   :  { %1399 = vperm.xlu0 %2539, %v1262_v5  }
 0x29f   :  { %v1225_v20 = vsel %vm1224_vm5, %v2567_v27, %v1221_v39 }
 0x2a0   :  { %v1265_v32 = vmul.f32 %v1225_v20, %v893_v11  ;;  %v4864_v20 = vld [vmem:[#allocation28_spill] sm:$0xff] }
 0x2a5   :  { %v3675_v12 = vpop.xlane.xlu0 %725 }
 0x2a6   :  { %1404 = vperm.xlu0 %2539, %v1263_v36  }
 0x2ad   :  { %v832_v28 = vpop.xlane.xlu0 %831 }
 0x2ae   :  { %v863_v5 = vmul.f32 0.0051020407, %v832_v28  ;;  %1409 = vperm.xlu0 %2539, %v1264_v7  }
 0x2af   :  { %1592 = vperm.xlu2 %2537, %v1499_v19  }
 0x2b0   :  { %v925_v50 = vadd.f32 1e-05, %v863_v5  ;;  %v770_v38 = vpop.xlane.xlu2 %769 }
 0x2b1   :  { %v848_v40 = vmul.f32 0.0051020407, %v770_v38 }
 0x2b2   :  { %2568 = vrsqrt.f32 %v925_v50  ;;  %vm1232_vm7 = vweird.f32 %v925_v50 }
 0x2b3   :  { %v910_v6 = vadd.f32 1e-05, %v848_v40 }
 0x2b5   :  { %2570 = vrsqrt.f32 %v910_v6  ;;  %vm1082_vm10 = vweird.f32 %v910_v6 }
 0x2b6   :  { %1414 = vperm.xlu0 %2539, %v1265_v32  }
 0x2b8   :  { %v2569_v36 = vpop.eup %2568  ;;  %v758_v17 = vpop.xlane.xlu2 %757 }
 0x2b9   :  { %v1227_v1 = vmul.f32 %v2569_v36, %v925_v50  ;;  %v845_v8 = vmul.f32 0.0051020407, %v758_v17  ;;  %vm1233_vm6 = vweird.f32 %v2569_v36 }
 0x2ba   :  { %v3690_v14 = vpop.xlane.xlu1 %765  ;;  %vm1234_vm8 = vmor %vm1232_vm7, %vm1233_vm6 }
 0x2bb   :  { %v2571_v56 = vpop.eup %2570  ;;  %v1228_v42 = vmul.f32 %v2569_v36, %v1227_v1  ;;  %v907_v7 = vadd.f32 1e-05, %v845_v8  ;;  %v894_v1 = vld [vmem:[%s4730_s2 + $0xf0] sm:$0xf] }
 0x2bc   :  { %v1077_v19 = vmul.f32 %v2571_v56, %v910_v6  ;;  %vm1083_vm9 = vweird.f32 %v2571_v56 }
 0x2bd   :  { %v1229_v28 = vmul.f32 0.5, %v1228_v42  ;;  %2572 = vrsqrt.f32 %v907_v7  ;;  %vm1084_vm11 = vmor %vm1082_vm10, %vm1083_vm9  ;;  %vm1052_vm13 = vweird.f32 %v907_v7 }
 0x2be   :  { %v1078_v5 = vmul.f32 %v2571_v56, %v1077_v19 }
 0x2bf   :  { %v1230_v38 = vsub.f32 1.5, %v1229_v28 }
 0x2c0   :  { %v1079_v27 = vmul.f32 0.5, %v1078_v5  ;;  %v746_v39 = vpop.xlane.xlu2 %745  ;;  %v1350_v40 = vpop.permute.xlu0 %1349 }
 0x2c1   :  { %v842_v11 = vmul.f32 0.0051020407, %v746_v39  ;;  %v1454_v32 = vmul.f32 %v1350_v40, %v4864_v20  ;;  %v1455_v17 = vmul.f32 %v1350_v40, %v4865_v43  ;;  %v1231_v8 = vmul.f32 %v2569_v36, %v1230_v38  ;;  %v879_v40 = vld [vmem:[%s4730_s2 + $0x78] sm:$0xff] }
 0x2c2   :  { %v1080_v42 = vsub.f32 1.5, %v1079_v27  ;;  %v754_v19 = vpop.xlane.xlu1 %753 }
 0x2c3   :  { %v2573_v28 = vpop.eup %2572  ;;  %v3697_v26 = vadd.f32 1e-05, %v842_v11  ;;  %v3700_v50 = vadd.f32 %v3624_v18, %v1454_v32  ;;  %v844_v5 = vmul.f32 0.0051020407, %v754_v19  ;;  %v1235_v39 = vsel %vm1234_vm8, %v2569_v36, %v1231_v8 }
 0x2c4   :  { %v1047_v20 = vmul.f32 %v2573_v28, %v907_v7  ;;  %v1266_v43 = vmul.f32 %v1235_v39, %v894_v1  ;;  %v1081_v38 = vmul.f32 %v2571_v56, %v1080_v42  ;;  %v3707_v11 = vadd.f32 %v3624_v18, %v1455_v17 }
 0x2c5   :  { %2574 = vrsqrt.f32 %v3697_v26  ;;  %v906_v27 = vadd.f32 1e-05, %v844_v5  ;;  %vm1053_vm12 = vweird.f32 %v2573_v28  ;;  %vm1022_vm6 = vweird.f32 %v3697_v26 }
 0x2c6   :  { %v1048_v37 = vmul.f32 %v2573_v28, %v1047_v20  ;;  %1419 = vperm.xlu0 %2539, %v1266_v43   ;;  %v1085_v32 = vsel %vm1084_vm11, %v2571_v56, %v1081_v38  ;;  %vm1054_vm14 = vmor %vm1052_vm13, %vm1053_vm12 }
 0x2c7   :  { %2576 = vrsqrt.f32 %v906_v27  ;;  %v1251_v36 = vmul.f32 %v1085_v32, %v879_v40  ;;  %vm1042_vm3 = vweird.f32 %v906_v27 }
 0x2c8   :  { %v1049_v6 = vmul.f32 0.5, %v1048_v37  ;;  %v734_v8 = vpop.xlane.xlu2 %733  ;;  %v1355_v1 = vpop.permute.xlu0 %1354 }
 0x2c9   :  { %v839_v19 = vmul.f32 0.0051020407, %v734_v8  ;;  %v1456_v39 = vmul.f32 %v1355_v1, %v3145_v55  ;;  %v1457_v42 = vmul.f32 %v1355_v1, %v3138_v33  ;;  %1344 = vperm.xlu1 %2538, %v1251_v36   ;;  %v876_v33 = vld [vmem:[%s4730_s2 + $0x60] sm:$0xff] }
 0x2ca   :  { %v1050_v45 = vsub.f32 1.5, %v1049_v6  ;;  %v742_v5 = vpop.xlane.xlu1 %741 }
 0x2cb   :  { %v3711_v44 = vpop.eup %2574  ;;  %v3713_v18 = vadd.f32 1e-05, %v839_v19  ;;  %v3716_v56 = vadd.f32 %v3678_v25, %v1456_v39  ;;  %v841_v17 = vmul.f32 0.0051020407, %v742_v5  ;;  %v3719_v37 = vadd.f32 %v3678_v25, %v1457_v42  ;;  %v1498_v25 = vld [vmem:[%s4729_s3 + $0x70] sm:$0xff] }
 0x2cc   :  { %v1017_v55 = vmul.f32 %v3711_v44, %v3697_v26  ;;  %v1051_v20 = vmul.f32 %v2573_v28, %v1050_v45  ;;  %vm1023_vm4 = vweird.f32 %v3711_v44 }
 0x2cd   :  { %v2577_v43 = vpop.eup %2576  ;;  %v3726_v40 = vadd.f32 1e-05, %v841_v17  ;;  %2578 = vrsqrt.f32 %v3713_v18  ;;  %vm1024_vm7 = vmor %vm1022_vm6, %vm1023_vm4  ;;  %vm992_vm12 = vweird.f32 %v3713_v18 }
 0x2ce   :  { %v1018_v38 = vmul.f32 %v3711_v44, %v1017_v55  ;;  %v1037_v32 = vmul.f32 %v2577_v43, %v906_v27  ;;  %v1055_v7 = vsel %vm1054_vm14, %v2573_v28, %v1051_v20  ;;  %vm1043_vm15 = vweird.f32 %v2577_v43  ;;  %v1496_v20 = vld [vmem:[%s4729_s3 + $0x60] sm:$0xff] }
 0x2cf   :  { %2580 = vrsqrt.f32 %v3726_v40  ;;  %v1248_v36 = vmul.f32 %v1055_v7, %v876_v33  ;;  %vm1044_vm5 = vmor %vm1042_vm3, %vm1043_vm15  ;;  %vm1012_vm9 = vweird.f32 %v3726_v40 }
 0x2d0   :  { %v1019_v6 = vmul.f32 0.5, %v1018_v38  ;;  %v1038_v8 = vmul.f32 %v2577_v43, %v1037_v32  ;;  %v3734_v45 = vpop.permute.xlu0 %1359  ;;  %v722_v55 = vpop.xlane.xlu2 %721  ;;  %v875_v38 = vld [vmem:[%s4730_s2 + $0x58] sm:$0xff] }
 0x2d1   :  { %1587 = vperm.xlu1 %2538, %v1498_v25   ;;  %1329 = vperm.xlu2 %2537, %v1248_v36   ;;  %v836_v25 = vmul.f32 0.0051020407, %v722_v55 }
 0x2d2   :  { %v1039_v1 = vmul.f32 0.5, %v1038_v8  ;;  %v730_v19 = vpop.xlane.xlu1 %729  ;;  %v1020_v5 = vsub.f32 1.5, %v1019_v6 }
 0x2d3   :  { %v838_v39 = vmul.f32 0.0051020407, %v730_v19  ;;  %v3736_v42 = vpop.eup %2578  ;;  %v847_v19 = vmul.f32 0.0051020407, %v3690_v14 }
 0x2d4   :  { %v1040_v17 = vsub.f32 1.5, %v1039_v1  ;;  %v987_v7 = vmul.f32 %v3736_v42, %v3713_v18  ;;  %v1021_v8 = vmul.f32 %v3711_v44, %v1020_v5  ;;  %vm993_vm11 = vweird.f32 %v3736_v42 }
 0x2d5   :  { %v3738_v61 = vpop.eup %2580  ;;  %v3740_v28 = vadd.f32 1e-05, %v838_v39  ;;  %vm994_vm13 = vmor %vm992_vm12, %vm993_vm11 }
 0x2d6   :  { %v1007_v33 = vmul.f32 %v3738_v61, %v3726_v40  ;;  %v1041_v32 = vmul.f32 %v2577_v43, %v1040_v17  ;;  %v3760_v17 = vadd.f32 1e-05, %v836_v25  ;;  %v988_v55 = vmul.f32 %v3736_v42, %v987_v7  ;;  %v1495_v7 = vld [vmem:[%s4729_s3 + $0x58] sm:$0xff]  ;;  %v1493_v40 = vld [vmem:[%s4729_s3 + $0x48] sm:$0xff] }
 0x2d7   :  { %2582 = vrsqrt.f32 %v3740_v28  ;;  %v1025_v5 = vsel %vm1024_vm7, %v3711_v44, %v1021_v8  ;;  %vm1013_vm8 = vweird.f32 %v3738_v61  ;;  %vm982_vm15 = vweird.f32 %v3740_v28 }
 0x2d8   :  { %v1008_v27 = vmul.f32 %v3738_v61, %v1007_v33  ;;  %v3754_v36 = vpop.permute.xlu0 %1364  ;;  %v1045_v6 = vsel %vm1044_vm5, %v2577_v43, %v1041_v32  ;;  %v873_v43 = vld [vmem:[%s4730_s2 + $0x48] sm:$0xff]  ;;  %v3767_v33 = vadd.f32 1e-05, %v847_v19  ;;  %2584 = vrsqrt.f32 %v3760_v17  ;;  %v4866_v19 = vld [vmem:[#allocation9_spill] sm:$0xff]  ;;  %vm3792_vm10 = vmor %vm1012_vm9, %vm1013_vm8 }
 0x2d9   :  { %1577 = vperm.xlu2 %2537, %v1496_v20   ;;  %v1247_v1 = vmul.f32 %v1045_v6, %v875_v38  ;;  %v1245_v26 = vmul.f32 %v1025_v5, %v873_v43  ;;  %v989_v32 = vmul.f32 0.5, %v988_v55  ;;  %vm962_vm5 = vweird.f32 %v3760_v17 }
 0x2da   :  { %v1009_v39 = vmul.f32 0.5, %v1008_v27  ;;  %v718_v38 = vpop.xlane.xlu1 %717  ;;  %v846_v27 = vmul.f32 0.0051020407, %v3635_v34  ;;  %2586 = vrsqrt.f32 %v3767_v33  ;;  %vm1072_vm8 = vweird.f32 %v3767_v33 }
 0x2db   :  { %1324 = vperm.xlu1 %2538, %v1247_v1   ;;  %v835_v6 = vmul.f32 0.0051020407, %v718_v38  ;;  %v2614_v1 = vld [vmem:[%s4728_s0 + $0x18] sm:$0xff]  ;;  %v990_v34 = vsub.f32 1.5, %v989_v32 }
 0x2dc   :  { %v1010_v20 = vsub.f32 1.5, %v1009_v39  ;;  %v3787_v39 = vsub.f32 %v2614_v1, %v4866_v19 }
 0x2dd   :  { %v3769_v14 = vpop.eup %2582  ;;  %v3796_v5 = vadd.f32 1e-05, %v835_v6 }
 0x2de   :  { %v977_v44 = vmul.f32 %v3769_v14, %v3740_v28  ;;  %v1011_v8 = vmul.f32 %v3738_v61, %v1010_v20  ;;  %4867 = vst [vmem:[#allocation28_spill] sm:$0xff] %v3787_v39  ;;  %v3790_v55 = vpop.eup %2584  ;;  %v2615_v20 = vld [vmem:[%s4728_s0 + $0x10] sm:$0xff]  ;;  %v648_v1 = vmul.f32 %v3787_v39, %v3787_v39  ;;  %vm983_vm14 = vweird.f32 %v3769_v14 }
 0x2df   :  { %v3802_v38 = vsub.f32 %v2615_v20, %v4866_v19  ;;  %v991_v20 = vmul.f32 %v3736_v42, %v990_v34  ;;  %2588 = vrsqrt.f32 %v3796_v5  ;;  %vm984_vm3 = vmor %vm982_vm15, %vm983_vm14  ;;  %vm963_vm4 = vweird.f32 %v3790_v55 }
 0x2e0   :  { %v3772_v25 = vpop.permute.xlu0 %1369  ;;  %v978_v32 = vmul.f32 %v3769_v14, %v977_v44  ;;  %v1015_v6 = vsel %vm3792_vm10, %v3738_v61, %v1011_v8  ;;  %v3818_v19 = vpop.eup %2586  ;;  %v711_v39 = vsel %vm79_vm1, %v648_v1, 0.0  ;;  %vm964_vm7 = vmor %vm962_vm5, %vm963_vm4  ;;  %vm952_vm12 = vweird.f32 %v3796_v5 }
 0x2e1   :  { %1314 = vperm.xlu2 %2537, %v1245_v26   ;;  %4870 = vst [vmem:[#allocation27_spill] sm:$0xff] %v3802_v38  ;;  %v3804_v26 = vadd.f32 1e-05, %v846_v27  ;;  %v957_v27 = vmul.f32 %v3790_v55, %v3760_v17  ;;  %v647_v8 = vmul.f32 %v3802_v38, %v3802_v38  ;;  %v1067_v43 = vmul.f32 %v3818_v19, %v3767_v33 }
 0x2e2   :  { %v979_v61 = vmul.f32 0.5, %v978_v32  ;;  %vm1073_vm6 = vweird.f32 %v3818_v19  ;;  %v840_v33 = vmul.f32 0.0051020407, %v3669_v31 }
 0x2e3   :  { %1572 = vperm.xlu1 %2538, %v1495_v7   ;;  %v872_v7 = vld [vmem:[%s4730_s2 + $0x40] sm:$0xff]  ;;  %2590 = vrsqrt.f32 %v3804_v26  ;;  %v958_v34 = vmul.f32 %v3790_v55, %v957_v27  ;;  %v712_v32 = vadd.f32 %v711_v39, %v647_v8  ;;  %v1068_v38 = vmul.f32 %v3818_v19, %v1067_v43  ;;  %vm1074_vm9 = vmor %vm1072_vm8, %vm1073_vm6 }
 0x2e4   :  { %v1244_v9 = vmul.f32 %v1015_v6, %v872_v7  ;;  %v995_v7 = vsel %vm994_vm13, %v3736_v42, %v991_v20  ;;  %v980_v18 = vsub.f32 1.5, %v979_v61  ;;  %v1492_v27 = vld [vmem:[%s4729_s3 + $0x40] sm:$0xff]  ;;  %v843_v42 = vmul.f32 0.0051020407, %v3662_v21  ;;  %v1490_v21 = vld [vmem:[%s4729_s3 + $0x30] sm:$0xff] }
 0x2e5   :  { %v3839_v6 = vpop.eup %2588  ;;  %v1069_v8 = vmul.f32 0.5, %v1068_v38  ;;  %vm1062_vm13 = vweird.f32 %v3804_v26  ;;  %v3898_v31 = vadd.f32 1e-05, %v840_v33  ;;  %v837_v33 = vmul.f32 0.0051020407, %v3675_v12 }
 0x2e6   :  { %v947_v39 = vmul.f32 %v3839_v6, %v3796_v5  ;;  %v981_v20 = vmul.f32 %v3769_v14, %v980_v18  ;;  %vm953_vm10 = vweird.f32 %v3839_v6  ;;  %v877_v5 = vld [vmem:[%s4730_s2 + $0x68] sm:$0xff] }
 0x2e7   :  { %v1070_v18 = vsub.f32 1.5, %v1069_v8  ;;  %vm954_vm14 = vmor %vm952_vm12, %vm953_vm10  ;;  %vm1002_vm10 = vweird.f32 %v3898_v31 }
 0x2e8   :  { %v3823_v44 = vpop.permute.xlu0 %1374 }
 0x2e9   :  { %1562 = vperm.xlu2 %2537, %v1493_v40   ;;  %v870_v40 = vld [vmem:[%s4730_s2 + $0x30] sm:$0xff]  ;;  %v3842_v60 = vpop.eup %2590 }
 0x2ea   :  { %v1242_v15 = vmul.f32 %v995_v7, %v870_v40  ;;  %v1057_v61 = vmul.f32 %v3842_v60, %v3804_v26  ;;  %v869_v40 = vld [vmem:[%s4730_s2 + $0x28] sm:$0xff]  ;;  %v985_v7 = vsel %vm984_vm3, %v3769_v14, %v981_v20  ;;  %v1071_v14 = vmul.f32 %v3818_v19, %v1070_v18 }
 0x2eb   :  { %1309 = vperm.xlu1 %2538, %v1244_v9   ;;  %v959_v9 = vmul.f32 0.5, %v958_v34  ;;  %v3857_v34 = vadd.f32 1e-05, %v843_v42  ;;  %vm1063_vm11 = vweird.f32 %v3842_v60 }
 0x2ec   :  { %v1058_v38 = vmul.f32 %v3842_v60, %v1057_v61  ;;  %vm1064_vm15 = vmor %vm1062_vm13, %vm1063_vm11 }
 0x2ed   :  { %v960_v43 = vsub.f32 1.5, %v959_v9  ;;  %v1241_v9 = vmul.f32 %v985_v7, %v869_v40  ;;  %2592 = vrsqrt.f32 %v3857_v34  ;;  %v1489_v7 = vld [vmem:[%s4729_s3 + $0x28] sm:$0xff]  ;;  %vm1032_vm4 = vweird.f32 %v3857_v34 }
 0x2ee   :  { %v1059_v42 = vmul.f32 0.5, %v1058_v38  ;;  %2594 = vrsqrt.f32 %v3898_v31 }
 0x2f0   :  { %713 = vadd.xlane.f32.xlu0 %v712_v32  ;;  %v3844_v1 = vpop.permute.xlu0 %1379  ;;  %v961_v32 = vmul.f32 %v3790_v55, %v960_v43  ;;  %v1060_v8 = vsub.f32 1.5, %v1059_v42  ;;  %v878_v43 = vld [vmem:[%s4730_s2 + $0x70] sm:$0xff] }
 0x2f1   :  { %1299 = vperm.xlu2 %2537, %v1242_v15   ;;  %v948_v15 = vmul.f32 %v3839_v6, %v947_v39  ;;  %v867_v39 = vld [vmem:[%s4730_s2 + $0x18] sm:$0xff] }
 0x2f2   :  { %v965_v20 = vsel %vm964_vm7, %v3790_v55, %v961_v32  ;;  %v1487_v32 = vld [vmem:[%s4729_s3 + $0x18] sm:$0xff] }
 0x2f3   :  { %1557 = vperm.xlu1 %2538, %v1492_v27   ;;  %v949_v27 = vmul.f32 0.5, %v948_v15  ;;  %v1239_v17 = vmul.f32 %v965_v20, %v867_v39  ;;  %v1075_v15 = vsel %vm1074_vm9, %v3818_v19, %v1071_v14  ;;  %v1061_v19 = vmul.f32 %v3842_v60, %v1060_v8 }
 0x2f4   :  { %v1250_v55 = vmul.f32 %v1075_v15, %v878_v43 }
 0x2f5   :  { %v950_v61 = vsub.f32 1.5, %v949_v27  ;;  %v1065_v26 = vsel %vm1064_vm15, %v3842_v60, %v1061_v19  ;;  %v1486_v60 = vld [vmem:[%s4729_s3 + $0x10] sm:$0xff]  ;;  %vm1794_vm15 = vcmask 949248  }
 0x2f7   :  { %v951_v38 = vmul.f32 %v3839_v6, %v950_v61  ;;  %v1249_v61 = vmul.f32 %v1065_v26, %v877_v5  ;;  %v1484_v26 = vld [vmem:[%s4729_s3] sm:$0xff] }
 0x2f8   :  { %v3869_v28 = vpop.permute.xlu0 %1384 }
 0x2f9   :  { %1547 = vperm.xlu2 %2537, %v1490_v21   ;;  %v2593_v21 = vpop.eup %2592  ;;  %v955_v27 = vsel %vm954_vm14, %v3839_v6, %v951_v38 }
 0x2fa   :  { %v1027_v18 = vmul.f32 %v2593_v21, %v3857_v34  ;;  %v2595_v15 = vpop.eup %2594  ;;  %vm1033_vm3 = vweird.f32 %v2593_v21 }
 0x2fb   :  { %1294 = vperm.xlu1 %2538, %v1241_v9   ;;  %v866_v9 = vld [vmem:[%s4730_s2 + $0x10] sm:$0xff]  ;;  %v997_v38 = vmul.f32 %v2595_v15, %v3898_v31  ;;  %vm1034_vm5 = vmor %vm1032_vm4, %vm1033_vm3  ;;  %vm1003_vm9 = vweird.f32 %v2595_v15 }
 0x2fc   :  { %v1028_v42 = vmul.f32 %v2593_v21, %v1027_v18  ;;  %v1238_v39 = vmul.f32 %v955_v27, %v866_v9  ;;  %vm1004_vm11 = vmor %vm1002_vm10, %vm1003_vm9 }
 0x2fd   :  { %v998_v27 = vmul.f32 %v2595_v15, %v997_v38  ;;  %v1494_v38 = vld [vmem:[%s4729_s3 + $0x50] sm:$0xff] }
 0x2fe   :  { %v1029_v8 = vmul.f32 0.5, %v1028_v42  ;;  %v874_v42 = vld [vmem:[%s4730_s2 + $0x50] sm:$0xff] }
 0x300   :  { %v3885_v40 = vpop.permute.xlu0 %1389  ;;  %v1030_v43 = vsub.f32 1.5, %v1029_v8 }
 0x301   :  { %1284 = vperm.xlu2 %2537, %v1239_v17  }
 0x302   :  { %v1031_v18 = vmul.f32 %v2593_v21, %v1030_v43 }
 0x303   :  { %1542 = vperm.xlu1 %2538, %v1489_v7   ;;  %v1497_v7 = vld [vmem:[%s4729_s3 + $0x68] sm:$0xff] }
 0x304   :  { %1339 = vperm.xlu0 %2539, %v1250_v55   ;;  %v1035_v12 = vsel %vm1034_vm5, %v2593_v21, %v1031_v18  ;;  %v864_v21 = vld [vmem:[%s4730_s2] sm:$0xff] }
 0x308   :  { %v3911_v14 = vpop.permute.xlu0 %1394 }
 0x309   :  { %1532 = vperm.xlu2 %2537, %v1487_v32   ;;  %v899_v32 = vadd.f32 1e-05, %v837_v33 }
 0x30a   :  { %v710_v20 = vpop.xlane.xlu2 %709 }
 0x30b   :  { %v833_v17 = vmul.f32 0.0051020407, %v710_v20  ;;  %1279 = vperm.xlu1 %2538, %v1238_v39   ;;  %v1246_v20 = vmul.f32 %v1035_v12, %v874_v42  ;;  %vm972_vm13 = vweird.f32 %v899_v32 }
 0x30c   :  { %1334 = vperm.xlu0 %2539, %v1249_v61   ;;  %v999_v61 = vmul.f32 0.5, %v998_v27 }
 0x30d   :  { %v895_v6 = vadd.f32 1e-05, %v833_v17 }
 0x30e   :  { %v1000_v43 = vsub.f32 1.5, %v999_v61  ;;  %v868_v61 = vld [vmem:[%s4730_s2 + $0x20] sm:$0xff] }
 0x30f   :  { %2596 = vrsqrt.f32 %v895_v6  ;;  %vm932_vm7 = vweird.f32 %v895_v6 }
 0x310   :  { %v3921_v55 = vpop.permute.xlu0 %1399  ;;  %2598 = vrsqrt.f32 %v899_v32 }
 0x313   :  { %1527 = vperm.xlu1 %2538, %v1486_v60  }
 0x314   :  { %1582 = vperm.xlu0 %2539, %v1497_v7  }
 0x315   :  { %v2597_v19 = vpop.eup %2596 }
 0x316   :  { %v927_v9 = vmul.f32 %v2597_v19, %v895_v6  ;;  %vm933_vm6 = vweird.f32 %v2597_v19  ;;  %v2599_v60 = vpop.eup %2598 }
 0x317   :  { %vm934_vm8 = vmor %vm932_vm7, %vm933_vm6  ;;  %v967_v18 = vmul.f32 %v2599_v60, %v899_v32  ;;  %vm973_vm12 = vweird.f32 %v2599_v60 }
 0x318   :  { %v928_v5 = vmul.f32 %v2597_v19, %v927_v9  ;;  %v3931_v8 = vpop.permute.xlu0 %1404  ;;  %v1001_v9 = vmul.f32 %v2595_v15, %v1000_v43  ;;  %vm974_vm14 = vmor %vm972_vm13, %vm973_vm12 }
 0x319   :  { %v968_v27 = vmul.f32 %v2599_v60, %v967_v18 }
 0x31a   :  { %v929_v39 = vmul.f32 0.5, %v928_v5  ;;  %v1005_v42 = vsel %vm1004_vm11, %v2595_v15, %v1001_v9  ;;  %v1593_v9 = vpop.permute.xlu2 %1592 }
 0x31b   :  { %1517 = vperm.xlu1 %2538, %v1484_v26   ;;  %v969_v5 = vmul.f32 0.5, %v968_v27  ;;  %v4872_v27 = vld [vmem:[#allocation8_spill] sm:$0xff] }
 0x31c   :  { %v930_v34 = vsub.f32 1.5, %v929_v39  ;;  %1319 = vperm.xlu0 %2539, %v1246_v20   ;;  %v1491_v20 = vld [vmem:[%s4729_s3 + $0x38] sm:$0xff] }
 0x31d   :  { %v970_v26 = vsub.f32 1.5, %v969_v5 }
 0x31e   :  { %v931_v17 = vmul.f32 %v2597_v19, %v930_v34 }
 0x31f   :  { %v971_v31 = vmul.f32 %v2599_v60, %v970_v26  ;;  %v1470_v26 = vmul.f32 %v3885_v40, %v3213_v30  ;;  %v1466_v30 = vmul.f32 %v3844_v1, %v3148_v63  ;;  %v1462_v63 = vmul.f32 %v3772_v25, %v3164_v3 }
 0x320   :  { %v935_v7 = vsel %vm934_vm8, %v2597_v19, %v931_v17  ;;  %v3940_v6 = vpop.permute.xlu0 %1409  ;;  %v871_v19 = vld [vmem:[%s4730_s2 + $0x38] sm:$0xff] }
 0x321   :  { %v1236_v33 = vmul.f32 %v935_v7, %v864_v21  ;;  %v1243_v12 = vmul.f32 %v1005_v42, %v871_v19  ;;  %v975_v15 = vsel %vm974_vm14, %v2599_v60, %v971_v31  ;;  %v1478_v7 = vmul.f32 %v3940_v6, %v3241_v22 }
 0x322   :  { %v1240_v43 = vmul.f32 %v975_v15, %v868_v61  ;;  %v4876_v61 = vld [vmem:[#allocation15_spill] sm:$0xff] }
 0x323   :  { %1269 = vperm.xlu2 %2537, %v1236_v33   ;;  %v4871_v33 = vld [vmem:[#allocation7_spill] sm:$0xff] }
 0x324   :  { %1567 = vperm.xlu0 %2539, %v1494_v38  }
 0x328   :  { %v3945_v39 = vpop.permute.xlu0 %1414 }
 0x329   :  { %v1480_v21 = vmul.f32 %v3945_v39, %v3252_v41  ;;  %v1476_v41 = vmul.f32 %v3931_v8, %v3227_v10  ;;  %v1472_v10 = vmul.f32 %v3911_v14, %v3183_v52  ;;  %v1468_v52 = vmul.f32 %v3869_v28, %v3194_v13 }
 0x32a   :  { %v1464_v13 = vmul.f32 %v3823_v44, %v3169_v4  ;;  %v1460_v4 = vmul.f32 %v3754_v36, %v3131_v23  ;;  %v4884_v23 = vld [vmem:[#allocation26_spill] sm:$0xff] }
 0x32b   :  { %v3969_v19 = vadd.f32 %v4872_v27, %v1480_v21  ;;  %v4002_v15 = vadd.f32 %v4876_v61, %v1472_v10  ;;  %v4877_v21 = vld [vmem:[#allocation17_spill] sm:$0xff] }
 0x32c   :  { %1304 = vperm.xlu0 %2539, %v1243_v12   ;;  %v4874_v12 = vld [vmem:[#allocation12_spill] sm:$0xff] }
 0x32d   :  { %v3985_v5 = vadd.f32 %v4874_v12, %v1476_v41  ;;  %v4881_v41 = vld [vmem:[#allocation29_spill] sm:$0xff] }
 0x32e   :  { %v1458_v3 = vmul.f32 %v3734_v45, %v4881_v41 }
 0x334   :  { %1552 = vperm.xlu0 %2539, %v1491_v20   ;;  %v4875_v20 = vld [vmem:[#allocation14_spill] sm:$0xff] }
 0x338   :  { %v3953_v34 = vpop.permute.xlu0 %1419 }
 0x339   :  { %v1482_v17 = vmul.f32 %v3953_v34, %v3322_v2 }
 0x33b   :  { %v3962_v32 = vadd.f32 %v4871_v33, %v1482_v17  ;;  %v1345_v38 = vpop.permute.xlu1 %1344  ;;  %v4009_v17 = vadd.f32 %v4877_v21, %v1470_v26  ;;  %v1483_v26 = vmul.f32 %v3953_v34, %v3325_v29  ;;  %v1477_v29 = vmul.f32 %v3931_v8, %v3230_v24 }
 0x33c   :  { %v1452_v18 = vmul.f32 %v1345_v38, %v3342_v48  ;;  %v1453_v60 = vmul.f32 %v1345_v38, %v3330_v35  ;;  %1289 = vperm.xlu0 %2539, %v1240_v43   ;;  %v1474_v48 = vmul.f32 %v3921_v55, %v3208_v59  ;;  %v4873_v35 = vld [vmem:[#allocation10_spill] sm:$0xff]  ;;  %v4878_v43 = vld [vmem:[#allocation19_spill] sm:$0xff]  ;;  %v4879_v38 = vld [vmem:[#allocation20_spill] sm:$0xff]  ;;  %v1469_v8 = vmul.f32 %v3869_v28, %v3197_v16 }
 0x33d   :  { %2432 = vmatpush.msk.msrb.mxu0 %vm173_vm0, %v3962_v32  ;;  %2506 = vmatpush.msk.msra.mxu3 %vm173_vm0, %v3962_v32  ;;  %v3978_v42 = vadd.f32 %v4873_v35, %v1478_v7  ;;  %v1488_v59 = vld [vmem:[%s4729_s3 + $0x20] sm:$0xff]  ;;  %v4016_v7 = vadd.f32 %v4878_v43, %v1468_v52  ;;  %v1481_v52 = vmul.f32 %v3945_v39, %v3255_v0 }
 0x33e   :  { %v1700_v22 = vadd.f32 %v1593_v9, %v1452_v18  ;;  %v1701_v2 = vadd.f32 %v1593_v9, %v1453_v60  ;;  %v3995_v31 = vadd.f32 %v4875_v20, %v1474_v48  ;;  %v4023_v18 = vadd.f32 %v4879_v38, %v1466_v30  ;;  %v4880_v60 = vld [vmem:[#allocation22_spill] sm:$0xff]  ;;  %v4883_v48 = vld [vmem:[#allocation25_spill] sm:$0xff] }
 0x33f   :  { %2006 = vmatpush.msrb.mxu0 %v3969_v19  ;;  %2508 = vmatpush.msra.mxu3 %v3969_v19  ;;  %v4030_v9 = vadd.f32 %v4880_v60, %v1464_v13  ;;  %v4042_v10 = vadd.f32 %v4883_v48, %v1460_v4  ;;  %v1479_v30 = vmul.f32 %v3940_v6, %v3244_v57  ;;  %v4108_v4 = vld [vmem:[%s4731_s1 + $0x118] sm:$0xff] }
 0x340   :  { %1894 = vmatpush.msrb.mxu2 %v1700_v22  ;;  %2114 = vmatpush.msrb.mxu1 %v1701_v2  ;;  %v4882_v22 = vld [vmem:[#allocation24_spill] sm:$0xff]  ;;  %v1731_v13 = vadd.f32 %v4871_v33, %v1483_v26  ;;  %v1729_v0 = vadd.f32 %v4872_v27, %v1481_v52  ;;  %v1475_v39 = vmul.f32 %v3921_v55, %v3202_v49 }
 0x341   :  { %2007 = vmatpush.msrb.mxu0 %v3978_v42  ;;  %2510 = vmatpush.msra.mxu3 %v3978_v42  ;;  %v4037_v2 = vadd.f32 %v4882_v22, %v1462_v63  ;;  %v1727_v34 = vadd.f32 %v4873_v35, %v1479_v30  ;;  %v1473_v57 = vmul.f32 %v3911_v14, %v3186_v51 }
 0x342   :  { %v1725_v6 = vadd.f32 %v4874_v12, %v1477_v29  ;;  %v1471_v33 = vmul.f32 %v3885_v40, %v3216_v46  ;;  %v1723_v24 = vadd.f32 %v4875_v20, %v1475_v39  ;;  %v1467_v27 = vmul.f32 %v3844_v1, %v3141_v62  ;;  %v4885_v20 = vld [vmem:[#allocation30_spill] sm:$0xff] }
 0x343   :  { %2008 = vmatpush.msrb.mxu0 %v3985_v5  ;;  %2512 = vmatpush.msra.mxu3 %v3985_v5  ;;  %v1721_v49 = vadd.f32 %v4876_v61, %v1473_v57  ;;  %v1465_v46 = vmul.f32 %v3823_v44, %v3172_v47  ;;  %v1717_v35 = vadd.f32 %v4878_v43, %v1469_v8  ;;  %v1588_v1 = vpop.permute.xlu1 %1587  ;;  %v4889_v8 = vld [vmem:[#allocation41_spill] sm:$0xff] }
 0x344   :  { %1537 = vperm.xlu0 %2539, %v1488_v59   ;;  %v4047_v59 = vadd.f32 %v4884_v23, %v1458_v3  ;;  %v1719_v14 = vadd.f32 %v4877_v21, %v1471_v33  ;;  %v1463_v16 = vmul.f32 %v3772_v25, %v3159_v54  ;;  %v1715_v28 = vadd.f32 %v4879_v38, %v1467_v27  ;;  %v4098_v54 = vld [vmem:[%s4731_s1 + $0x108] sm:$0xff]  ;;  %v4886_v3 = vld [vmem:[#allocation40_spill] sm:$0xff] }
 0x345   :  { %2009 = vmatpush.msrb.mxu0 %v3995_v31  ;;  %2514 = vmatpush.msra.mxu3 %v3995_v31  ;;  %v1461_v62 = vmul.f32 %v3754_v36, %v3122_v58  ;;  %v1713_v12 = vadd.f32 %v4880_v60, %v1465_v46  ;;  %v1459_v47 = vmul.f32 %v3734_v45, %v4885_v20  ;;  %v1330_v36 = vpop.permute.xlu2 %1329 }
 0x346   :  { %v1711_v44 = vadd.f32 %v4882_v22, %v1463_v16  ;;  %v4891_v16 = vld [vmem:[#allocation4_spill] sm:$0xff] }
 0x347   :  { %2010 = vmatpush.msrb.mxu0 %v4002_v15  ;;  %2516 = vmatpush.msra.mxu3 %v4002_v15  ;;  %v1709_v58 = vadd.f32 %v4883_v48, %v1461_v62  ;;  %v1707_v45 = vadd.f32 %v4884_v23, %v1459_v47  ;;  %v865_v48 = vld [vmem:[%s4730_s2 + $0x8] sm:$0xff] }
 0x348   :  { %v4892_v62 = vld [vmem:[#allocation23_spill] sm:$0xff] }
 0x349   :  { %2011 = vmatpush.msrb.mxu0 %v4009_v17  ;;  %2518 = vmatpush.msra.mxu3 %v4009_v17 }
 0x34b   :  { %2012 = vmatpush.msrb.mxu0 %v4016_v7  ;;  %2520 = vmatpush.msra.mxu3 %v4016_v7 }
 0x34d   :  { %2013 = vmatpush.msrb.mxu0 %v4023_v18  ;;  %2522 = vmatpush.msra.mxu3 %v4023_v18  ;;  %v1325_v43 = vpop.permute.xlu1 %1324  ;;  %v1578_v23 = vpop.permute.xlu2 %1577 }
 0x34f   :  { %2014 = vmatpush.msrb.mxu0 %v4030_v9  ;;  %2524 = vmatpush.msra.mxu3 %v4030_v9 }
 0x351   :  { %2015 = vmatpush.msrb.mxu0 %v4037_v2  ;;  %2526 = vmatpush.msra.mxu3 %v4037_v2 }
 0x353   :  { %2016 = vmatpush.msrb.mxu0 %v4042_v10  ;;  %2528 = vmatpush.msra.mxu3 %v4042_v10 }
 0x355   :  { %2017 = vmatpush.msrb.mxu0 %v4047_v59  ;;  %2530 = vmatpush.msra.mxu3 %v4047_v59  ;;  %v1315_v39 = vpop.permute.xlu2 %1314 }
 0x357   :  { %2018 = vmatpush.msrb.mxu0 %v3716_v56  ;;  %2532 = vmatpush.msra.mxu3 %v3716_v56 }
 0x359   :  { %2019 = vmatpush.msrb.mxu0 %v3700_v50  ;;  %2534 = vmatpush.msra.mxu3 %v3700_v50 }
 0x35a   :  { %2449 = vmatmul.msk.f32.vlgmr.msra.gmra.mxu3 %vm1794_vm15, %v4098_v54 }
 0x35b   :  { %2464 = vmatpush.msk.msrb.mxu3 %vm173_vm0, %v1731_v13  ;;  %v1573_v13 = vpop.permute.xlu1 %1572 }
 0x35d   :  { %2226 = vmatpush.msrb.mxu3 %v1729_v0  ;;  %v1485_v0 = vld [vmem:[%s4729_s3 + $0x8] sm:$0xff] }
 0x35f   :  { %2227 = vmatpush.msrb.mxu3 %v1727_v34  ;;  %v4887_v34 = vld [vmem:[#allocation32_spill] sm:$0xff] }
 0x361   :  { %2228 = vmatpush.msrb.mxu3 %v1725_v6  ;;  %v4888_v6 = vld [vmem:[#allocation31_spill] sm:$0xff] }
 0x362   :  { %2450 = vmatmul.msk.f32.gmra.mxu3 %vm1794_vm15, %v4108_v4 }
 0x363   :  { %2229 = vmatpush.msrb.mxu3 %v1723_v24  ;;  %v714_v55 = vpop.xlane.xlu0 %713  ;;  %v4133_v24 = vld [vmem:[%s4731_s1 + $0x138] sm:$0xff] }
 0x364   :  { %v834_v51 = vmul.f32 0.0051020407, %v714_v55  ;;  %v1310_v55 = vpop.permute.xlu1 %1309 }
 0x365   :  { %2230 = vmatpush.msrb.mxu3 %v1721_v49  ;;  %v1446_v49 = vmul.f32 %v1330_v36, %v4889_v8 }
 0x366   :  { %v896_v40 = vadd.f32 1e-05, %v834_v51  ;;  %v4890_v51 = vld [vmem:[#allocation39_spill] sm:$0xff] }
 0x367   :  { %2231 = vmatpush.msrb.mxu3 %v1719_v14  ;;  %v1447_v14 = vmul.f32 %v1330_v36, %v4890_v51  ;;  %v4900_v51 = vld [vmem:[#allocation35_spill] sm:$0xff] }
 0x368   :  { %2600 = vrsqrt.f32 %v896_v40  ;;  %vm942_vm4 = vweird.f32 %v896_v40 }
 0x369   :  { %2232 = vmatpush.msrb.mxu3 %v1717_v35  ;;  %v1694_v35 = vadd.f32 %v1578_v23, %v1446_v49  ;;  %v4171_v49 = vld [vmem:[%s4731_s1 + $0x178] sm:$0xff] }
 0x36b   :  { %2233 = vmatpush.msrb.mxu3 %v1715_v28  ;;  %v1444_v28 = vmul.f32 %v1325_v43, %v4891_v16  ;;  %v4902_v16 = vld [vmem:[#allocation3_spill] sm:$0xff] }
 0x36c   :  { %v1558_v36 = vpop.permute.xlu1 %1557 }
 0x36d   :  { %2234 = vmatpush.msrb.mxu3 %v1713_v12  ;;  %v1695_v12 = vadd.f32 %v1578_v23, %v1447_v14  ;;  %v1692_v20 = vadd.f32 %v1573_v13, %v1444_v28 }
 0x36e   :  { %v2601_v25 = vpop.eup %2600 }
 0x36f   :  { %2235 = vmatpush.msrb.mxu3 %v1711_v44  ;;  %v937_v61 = vmul.f32 %v2601_v25, %v896_v40  ;;  %vm943_vm3 = vweird.f32 %v2601_v25  ;;  %v1563_v44 = vpop.permute.xlu2 %1562 }
 0x370   :  { %vm944_vm5 = vmor %vm942_vm4, %vm943_vm3 }
 0x371   :  { %2236 = vmatpush.msrb.mxu3 %v1709_v58  ;;  %v938_v21 = vmul.f32 %v2601_v25, %v937_v61  ;;  %v4893_v61 = vld [vmem:[#allocation34_spill] sm:$0xff] }
 0x373   :  { %2237 = vmatpush.msrb.mxu3 %v1707_v45  ;;  %v939_v63 = vmul.f32 0.5, %v938_v21  ;;  %v4894_v21 = vld [vmem:[#allocation33_spill] sm:$0xff] }
 0x375   :  { %2238 = vmatpush.msrb.mxu3 %v3719_v37  ;;  %v940_v38 = vsub.f32 1.5, %v939_v63  ;;  %v4153_v63 = vld [vmem:[%s4731_s1 + $0x158] sm:$0xff] }
 0x376   :  { %v1340_v60 = vpop.permute.xlu0 %1339 }
 0x377   :  { %2239 = vmatpush.msrb.mxu3 %v3707_v11  ;;  %v1450_v41 = vmul.f32 %v1340_v60, %v3375_v53  ;;  %v1451_v22 = vmul.f32 %v1340_v60, %v4886_v3  ;;  %v941_v37 = vmul.f32 %v2601_v25, %v940_v38  ;;  %v4121_v53 = vld [vmem:[%s4731_s1 + $0x128] sm:$0xff]  ;;  %v4895_v38 = vld [vmem:[#allocation2_spill] sm:$0xff] }
 0x378   :  { %2451 = vmatmul.msk.f32.gmra.mxu3 %vm1794_vm15, %v4121_v53  ;;  %v1440_v60 = vmul.f32 %v1315_v39, %v4895_v38  ;;  %v4896_v3 = vld [vmem:[#allocation6_spill] sm:$0xff] }
 0x379   :  { %v1698_v26 = vadd.f32 %v1588_v1, %v1450_v41  ;;  %v1699_v52 = vadd.f32 %v1588_v1, %v1451_v22  ;;  %v945_v30 = vsel %vm944_vm5, %v2601_v25, %v941_v37  ;;  %v1445_v1 = vmul.f32 %v1325_v43, %v4892_v62  ;;  %v4144_v25 = vld [vmem:[%s4731_s1 + $0x148] sm:$0xff] }
 0x37a   :  { %v1237_v11 = vmul.f32 %v945_v30, %v865_v48  ;;  %v1441_v22 = vmul.f32 %v1315_v39, %v4896_v3  ;;  %v1300_v48 = vpop.permute.xlu2 %1299  ;;  %v4164_v39 = vld [vmem:[%s4731_s1 + $0x168] sm:$0xff] }
 0x37b   :  { %1895 = vmatpush.msrb.mxu2 %v1698_v26  ;;  %2115 = vmatpush.msrb.mxu1 %v1699_v52  ;;  %v1693_v47 = vadd.f32 %v1573_v13, %v1445_v1  ;;  %v1688_v26 = vadd.f32 %v1563_v44, %v1440_v60  ;;  %v4897_v52 = vld [vmem:[#allocation21_spill] sm:$0xff]  ;;  %v1435_v28 = vmul.f32 %v1300_v48, %v4902_v16 }
 0x37c   :  { %1274 = vperm.xlu0 %2539, %v1237_v11   ;;  %v1438_v30 = vmul.f32 %v1310_v55, %v4897_v52  ;;  %v4898_v11 = vld [vmem:[#allocation5_spill] sm:$0xff] }
 0x37d   :  { %v1439_v13 = vmul.f32 %v1310_v55, %v4898_v11  ;;  %v4899_v55 = vld [vmem:[#allocation36_spill] sm:$0xff]  ;;  %v4908_v11 = vld [vmem:[#allocation13_spill] sm:$0xff] }
 0x37e   :  { %v1335_v29 = vpop.permute.xlu0 %1334  ;;  %v4225_v16 = vld [vmem:[%s4731_s1 + $0x1d8] sm:$0xff] }
 0x37f   :  { %v1448_v57 = vmul.f32 %v1335_v29, %v4887_v34  ;;  %v1449_v33 = vmul.f32 %v1335_v29, %v4888_v6  ;;  %v1689_v29 = vadd.f32 %v1563_v44, %v1441_v22  ;;  %v1686_v34 = vadd.f32 %v1558_v36, %v1438_v30  ;;  %v4904_v44 = vld [vmem:[#allocation16_spill] sm:$0xff]  ;;  %v4905_v22 = vld [vmem:[#allocation38_spill] sm:$0xff] }
 0x380   :  { %2452 = vmatmul.msk.f32.gmra.mxu3 %vm1794_vm15, %v4133_v24 }
 0x384   :  { %1522 = vperm.xlu0 %2539, %v1485_v0   ;;  %v1295_v0 = vpop.permute.xlu1 %1294 }
 0x386   :  { %v1583_v27 = vpop.permute.xlu0 %1582 }
 0x387   :  { %v1696_v46 = vadd.f32 %v1583_v27, %v1448_v57  ;;  %v1697_v40 = vadd.f32 %v1583_v27, %v1449_v33  ;;  %v1687_v57 = vadd.f32 %v1558_v36, %v1439_v13  ;;  %v1548_v33 = vpop.permute.xlu2 %1547 }
 0x388   :  { %2453 = vmatmul.msk.f32.gmra.mxu3 %vm1794_vm15, %v4144_v25  ;;  %v1683_v36 = vadd.f32 %v1548_v33, %v1435_v28  ;;  %v4232_v28 = vld [vmem:[%s4731_s1 + $0x1e8] sm:$0xf] }
 0x389   :  { %1896 = vmatpush.msrb.mxu2 %v1696_v46  ;;  %2116 = vmatpush.msrb.mxu1 %v1697_v40  ;;  %v4901_v46 = vld [vmem:[#allocation18_spill] sm:$0xff] }
 0x38a   :  { %v1434_v40 = vmul.f32 %v1300_v48, %v4901_v46  ;;  %v4204_v46 = vld [vmem:[%s4731_s1 + $0x1a8] sm:$0xff] }
 0x38b   :  { %1897 = vmatpush.msrb.mxu2 %v1694_v35  ;;  %2117 = vmatpush.msrb.mxu1 %v1695_v12 }
 0x38c   :  { %v1543_v8 = vpop.permute.xlu1 %1542  ;;  %v1682_v12 = vadd.f32 %v1548_v33, %v1434_v40  ;;  %v4211_v40 = vld [vmem:[%s4731_s1 + $0x1b8] sm:$0xff] }
 0x38d   :  { %1898 = vmatpush.msrb.mxu2 %v1692_v20  ;;  %2118 = vmatpush.msrb.mxu1 %v1693_v47  ;;  %v4903_v20 = vld [vmem:[#allocation43_spill] sm:$0xff] }
 0x38e   :  { %v1320_v58 = vpop.permute.xlu0 %1319  ;;  %v1432_v47 = vmul.f32 %v1295_v0, %v4903_v20 }
 0x38f   :  { %v1442_v45 = vmul.f32 %v1320_v58, %v4893_v61  ;;  %v1443_v43 = vmul.f32 %v1320_v58, %v4894_v21  ;;  %v1433_v58 = vmul.f32 %v1295_v0, %v4904_v44  ;;  %v1285_v61 = vpop.permute.xlu2 %1284 }
 0x390   :  { %2454 = vmatmul.msk.f32.gmra.mxu3 %vm1794_vm15, %v4153_v63  ;;  %v1429_v13 = vmul.f32 %v1285_v61, %v4908_v11 }
 0x391   :  { %v1681_v21 = vadd.f32 %v1543_v8, %v1433_v58  ;;  %v4911_v58 = vld [vmem:[#allocation27_spill] sm:$0xff] }
 0x394   :  { %v1280_v38 = vpop.permute.xlu1 %1279 }
 0x396   :  { %v1568_v41 = vpop.permute.xlu0 %1567 }
 0x397   :  { %v1690_v37 = vadd.f32 %v1568_v41, %v1442_v45  ;;  %v1691_v23 = vadd.f32 %v1568_v41, %v1443_v43  ;;  %v1680_v45 = vadd.f32 %v1543_v8, %v1432_v47  ;;  %v4184_v43 = vld [vmem:[%s4731_s1 + $0x188] sm:$0xff]  ;;  %v4191_v41 = vld [vmem:[%s4731_s1 + $0x198] sm:$0xff]  ;;  %v1533_v3 = vpop.permute.xlu2 %1532 }
 0x398   :  { %2455 = vmatmul.msk.f32.gmra.mxu3 %vm1794_vm15, %v4164_v39  ;;  %v4910_v8 = vld [vmem:[#allocation11_spill] sm:$0xff] }
 0x399   :  { %1899 = vmatpush.msrb.mxu2 %v1690_v37  ;;  %2119 = vmatpush.msrb.mxu1 %v1691_v23  ;;  %v4906_v37 = vld [vmem:[#allocation37_spill] sm:$0xff]  ;;  %v1737_v47 = vld [vmem:[%s4731_s1 + $0x28] sm:$0xff] }
 0x39b   :  { %1900 = vmatpush.msrb.mxu2 %v1688_v26  ;;  %2120 = vmatpush.msrb.mxu1 %v1689_v29  ;;  %v4907_v26 = vld [vmem:[#allocation42_spill] sm:$0xff] }
 0x39c   :  { %v1428_v52 = vmul.f32 %v1285_v61, %v4907_v26  ;;  %v4912_v61 = vld [vmem:[#allocation28_spill] sm:$0xff] }
 0x39d   :  { %1901 = vmatpush.msrb.mxu2 %v1686_v34  ;;  %2121 = vmatpush.msrb.mxu1 %v1687_v57  ;;  %v1528_v34 = vpop.permute.xlu1 %1527 }
 0x39e   :  { %v1305_v6 = vpop.permute.xlu0 %1304  ;;  %v1676_v57 = vadd.f32 %v1533_v3, %v1428_v52 }
 0x39f   :  { %v1436_v27 = vmul.f32 %v1305_v6, %v4899_v55  ;;  %v1437_v14 = vmul.f32 %v1305_v6, %v4900_v51  ;;  %v4909_v6 = vld [vmem:[#allocation44_spill] sm:$0xff]  ;;  %v1427_v55 = vmul.f32 %v1280_v38, %v4910_v8  ;;  %v1270_v44 = vpop.permute.xlu2 %1269  ;;  %v1748_v8 = vld [vmem:[%s4731_s1 + $0x80] sm:$0xff] }
 0x3a0   :  { %2456 = vmatmul.msk.f32.gmra.mxu3 %vm1794_vm15, %v4171_v49  ;;  %v1426_v33 = vmul.f32 %v1280_v38, %v4909_v6 }
 0x3a2   :  { %v1674_v51 = vadd.f32 %v1528_v34, %v1426_v33  ;;  %v1753_v33 = vld [vmem:[%s4731_s1 + $0xa8] sm:$0xff] }
 0x3a6   :  { %v1553_v35 = vpop.permute.xlu0 %1552 }
 0x3a7   :  { %v1684_v62 = vadd.f32 %v1553_v35, %v1436_v27  ;;  %v1685_v1 = vadd.f32 %v1553_v35, %v1437_v14  ;;  %v1677_v27 = vadd.f32 %v1533_v3, %v1429_v13  ;;  %v1675_v14 = vadd.f32 %v1528_v34, %v1427_v55  ;;  %v4218_v35 = vld [vmem:[%s4731_s1 + $0x1c8] sm:$0xff]  ;;  %v1739_v13 = vld [vmem:[%s4731_s1 + $0x38] sm:$0xff] }
 0x3a8   :  { %2457 = vmatmul.msk.f32.gmra.mxu3 %vm1794_vm15, %v4184_v43  ;;  %v1751_v34 = vld [vmem:[%s4731_s1 + $0x98] sm:$0xff] }
 0x3a9   :  { %1902 = vmatpush.msrb.mxu2 %v1684_v62  ;;  %2122 = vmatpush.msrb.mxu1 %v1685_v1  ;;  %v1733_v62 = vld [vmem:[%s4731_s1 + $0x8] sm:$0xff]  ;;  %v1735_v1 = vld [vmem:[%s4731_s1 + $0x18] sm:$0xff] }
 0x3aa   :  { %2433 = vmatmul.msk.f32.vlgmr.msrb.gmra.mxu0 %vm1794_vm15, %v1733_v62 }
 0x3ab   :  { %1903 = vmatpush.msrb.mxu2 %v1682_v12  ;;  %2123 = vmatpush.msrb.mxu1 %v1683_v36 }
 0x3ad   :  { %1904 = vmatpush.msrb.mxu2 %v1680_v45  ;;  %2124 = vmatpush.msrb.mxu1 %v1681_v21  ;;  %v1518_v21 = vpop.permute.xlu1 %1517 }
 0x3ae   :  { %v1290_v60 = vpop.permute.xlu0 %1289 }
 0x3af   :  { %v1430_v48 = vmul.f32 %v1290_v60, %v4905_v22  ;;  %v1431_v23 = vmul.f32 %v1290_v60, %v4906_v37  ;;  %v4913_v60 = vld [vmem:[#allocation45_spill] sm:$0xff]  ;;  %v4914_v22 = vld [vmem:[#allocation46_spill] sm:$0xff] }
 0x3b0   :  { %2458 = vmatmul.msk.f32.gmra.mxu3 %vm1794_vm15, %v4191_v41  ;;  %v1422_v3 = vmul.f32 %v1270_v44, %v4913_v60 }
 0x3b2   :  { %2434 = vmatmul.msk.f32.gmra.mxu0 %vm1794_vm15, %v1735_v1  ;;  %v1670_v26 = vadd.f32 %v1518_v21, %v1422_v3 }
 0x3b6   :  { %v1538_v30 = vpop.permute.xlu0 %1537 }
 0x3b7   :  { %v1678_v29 = vadd.f32 %v1538_v30, %v1430_v48  ;;  %v1679_v0 = vadd.f32 %v1538_v30, %v1431_v23  ;;  %v1423_v48 = vmul.f32 %v1270_v44, %v4914_v22  ;;  %v1732_v30 = vld [vmem:[%s4731_s1] sm:$0xff]  ;;  %v1754_v44 = vld [vmem:[%s4731_s1 + $0xb0] sm:$0xff] }
 0x3b8   :  { %2459 = vmatmul.msk.f32.gmra.mxu3 %vm1794_vm15, %v4204_v46  ;;  %v1760_v22 = vld [vmem:[%s4731_s1 + $0xe0] sm:$0xff] }
 0x3b9   :  { %1905 = vmatpush.msrb.mxu2 %v1678_v29  ;;  %2125 = vmatpush.msrb.mxu1 %v1679_v0  ;;  %v1671_v52 = vadd.f32 %v1518_v21, %v1423_v48  ;;  %v1734_v29 = vld [vmem:[%s4731_s1 + $0x10] sm:$0xff]  ;;  %v4401_v21 = vld [vmem:[%s4731_s1 + $0xf8] sm:$0xff] }
 0x3ba   :  { %2435 = vmatmul.msk.f32.gmra.mxu0 %vm1794_vm15, %v1737_v47 }
 0x3bb   :  { %1906 = vmatpush.msrb.mxu2 %v1676_v57  ;;  %2126 = vmatpush.msrb.mxu1 %v1677_v27  ;;  %v1746_v57 = vld [vmem:[%s4731_s1 + $0x70] sm:$0xff]  ;;  %v1755_v27 = vld [vmem:[%s4731_s1 + $0xb8] sm:$0xff] }
 0x3bd   :  { %1907 = vmatpush.msrb.mxu2 %v1674_v51  ;;  %2127 = vmatpush.msrb.mxu1 %v1675_v14  ;;  %v1750_v51 = vld [vmem:[%s4731_s1 + $0x90] sm:$0xff] }
 0x3c0   :  { %2460 = vmatmul.msk.f32.gmra.mxu3 %vm1794_vm15, %v4211_v40 }
 0x3c2   :  { %2436 = vmatmul.msk.f32.gmra.mxu0 %vm1794_vm15, %v1739_v13 }
 0x3c8   :  { %2461 = vmatmul.msk.f32.gmra.mxu3 %vm1794_vm15, %v4218_v35 }
 0x3d0   :  { %2462 = vmatmul.msk.f32.gmra.mxu3 %vm1794_vm15, %v4225_v16 }
 0x3d8   :  { %2463 = vmatmul.msk.f32.gmra.mxu3 %vm1794_vm15, %v4232_v28 }
 0x3dd   :  { %v4246_v20 = vpop.f32.mrf.mxu3 }
 0x3e0   :  { %2465 = vmatmul.msk.f32.vlgmr.msrb.gmra.mxu3 %vm1794_vm15, %v1733_v62  ;;  %v1757_v62 = vld [vmem:[%s4731_s1 + $0xc8] sm:$0xff] }
 0x3e5   :  { %v4260_v11 = vpop.f32.mrf.mxu3 }
 0x3e8   :  { %2466 = vmatmul.msk.f32.gmra.mxu3 %vm1794_vm15, %v1735_v1  ;;  %v1752_v1 = vld [vmem:[%s4731_s1 + $0xa0] sm:$0xff] }
 0x3ee   :  { %v1275_v12 = vpop.permute.xlu0 %1274 }
 0x3ef   :  { %v1424_v36 = vmul.f32 %v1275_v12, %v4911_v58  ;;  %v1425_v45 = vmul.f32 %v1275_v12, %v4912_v61  ;;  %v1756_v61 = vld [vmem:[%s4731_s1 + $0xc0] sm:$0xff] }
 0x3f0   :  { %2467 = vmatmul.msk.f32.gmra.mxu3 %vm1794_vm15, %v1737_v47  ;;  %v1759_v47 = vld [vmem:[%s4731_s1 + $0xd8] sm:$0xff] }
 0x3f6   :  { %v1523_v38 = vpop.permute.xlu0 %1522 }
 0x3f7   :  { %v1672_v37 = vadd.f32 %v1523_v38, %v1424_v36  ;;  %v1673_v23 = vadd.f32 %v1523_v38, %v1425_v45  ;;  %v1761_v36 = vld [vmem:[%s4731_s1 + $0xe8] sm:$0xff]  ;;  %v1758_v38 = vld [vmem:[%s4731_s1 + $0xd0] sm:$0xff] }
 0x3f8   :  { %2468 = vmatmul.msk.f32.gmra.mxu3 %vm1794_vm15, %v1739_v13 }
 0x3f9   :  { %1908 = vmatpush.msrb.mxu2 %v1672_v37  ;;  %2128 = vmatpush.msrb.mxu1 %v1673_v23  ;;  %v1762_v23 = vld [vmem:[%s4731_s1 + $0xf0] sm:$0xff] }
 0x3fb   :  { %1909 = vmatpush.msrb.mxu2 %v1670_v26  ;;  %2129 = vmatpush.msrb.mxu1 %v1671_v52  ;;  %v4274_v0 = vpop.f32.mrf.mxu3 }
 0x3fc   :  { %1910 = vmatmul.f32.vlgmr.msrb.gmra.mxu2 %v1732_v30  ;;  %2130 = vmatmul.f32.vlgmr.msrb.gmra.mxu1 %v1732_v30 }
 0x3fd   :  { %2505 = vmatpush.msk.msra.mxu2 %vm173_vm0, %v3962_v32  ;;  %v1741_v32 = vld [vmem:[%s4731_s1 + $0x48] sm:$0xff] }
 0x3fe   :  { %2437 = vmatmul.msk.f32.gmra.mxu0 %vm1794_vm15, %v1741_v32 }
 0x3ff   :  { %2507 = vmatpush.msra.mxu2 %v3969_v19  ;;  %v1736_v19 = vld [vmem:[%s4731_s1 + $0x20] sm:$0xff] }
 0x400   :  { %2469 = vmatmul.msk.f32.gmra.mxu3 %vm1794_vm15, %v1741_v32 }
 0x401   :  { %2509 = vmatpush.msra.mxu2 %v3978_v42 }
 0x403   :  { %2511 = vmatpush.msra.mxu2 %v3985_v5  ;;  %v4288_v42 = vpop.f32.mrf.mxu3  ;;  %v1743_v5 = vld [vmem:[%s4731_s1 + $0x58] sm:$0xff] }
 0x404   :  { %1913 = vmatmul.f32.gmra.mxu2 %v1734_v29  ;;  %2133 = vmatmul.f32.gmra.mxu1 %v1734_v29 }
 0x405   :  { %2513 = vmatpush.msra.mxu2 %v3995_v31  ;;  %v1738_v31 = vld [vmem:[%s4731_s1 + $0x30] sm:$0xff] }
 0x406   :  { %2438 = vmatmul.msk.f32.gmra.mxu0 %vm1794_vm15, %v1743_v5 }
 0x407   :  { %2515 = vmatpush.msra.mxu2 %v4002_v15 }
 0x408   :  { %2470 = vmatmul.msk.f32.gmra.mxu3 %vm1794_vm15, %v1743_v5 }
 0x409   :  { %2517 = vmatpush.msra.mxu2 %v4009_v17  ;;  %v1745_v17 = vld [vmem:[%s4731_s1 + $0x68] sm:$0xff] }
 0x40b   :  { %2519 = vmatpush.msra.mxu2 %v4016_v7  ;;  %v4302_v15 = vpop.f32.mrf.mxu3  ;;  %v1740_v7 = vld [vmem:[%s4731_s1 + $0x40] sm:$0xff] }
 0x40c   :  { %1916 = vmatmul.f32.gmra.mxu2 %v1736_v19  ;;  %2136 = vmatmul.f32.gmra.mxu1 %v1736_v19  ;;  %v1766_v19 = vld [vmem:[%s4731_s1 + $0x110] sm:$0xff] }
 0x40d   :  { %2521 = vmatpush.msra.mxu2 %v4023_v18 }
 0x40e   :  { %2439 = vmatmul.msk.f32.gmra.mxu0 %vm1794_vm15, %v1745_v17 }
 0x40f   :  { %2523 = vmatpush.msra.mxu2 %v4030_v9  ;;  %v1747_v9 = vld [vmem:[%s4731_s1 + $0x78] sm:$0xff] }
 0x410   :  { %2471 = vmatmul.msk.f32.gmra.mxu3 %vm1794_vm15, %v1745_v17 }
 0x411   :  { %2525 = vmatpush.msra.mxu2 %v4037_v2  ;;  %v1749_v2 = vld [vmem:[%s4731_s1 + $0x88] sm:$0xff] }
 0x413   :  { %2527 = vmatpush.msra.mxu2 %v4042_v10  ;;  %v4316_v18 = vpop.f32.mrf.mxu3  ;;  %v1744_v10 = vld [vmem:[%s4731_s1 + $0x60] sm:$0xff] }
 0x414   :  { %1919 = vmatmul.f32.gmra.mxu2 %v1738_v31  ;;  %2139 = vmatmul.f32.gmra.mxu1 %v1738_v31 }
 0x415   :  { %2529 = vmatpush.msra.mxu2 %v4047_v59 }
 0x416   :  { %2440 = vmatmul.msk.f32.gmra.mxu0 %vm1794_vm15, %v1747_v9 }
 0x417   :  { %2531 = vmatpush.msra.mxu2 %v3716_v56 }
 0x418   :  { %2472 = vmatmul.msk.f32.gmra.mxu3 %vm1794_vm15, %v1747_v9  ;;  %v1768_v9 = vld [vmem:[%s4731_s1 + $0x120] sm:$0xff] }
 0x419   :  { %2533 = vmatpush.msra.mxu2 %v3700_v50  ;;  %v1742_v50 = vld [vmem:[%s4731_s1 + $0x50] sm:$0xff] }
 0x41b   :  { %v4326_v56 = vpop.f32.mrf.mxu3 }
 0x41c   :  { %1922 = vmatmul.f32.gmra.mxu2 %v1740_v7  ;;  %2142 = vmatmul.f32.gmra.mxu1 %v1740_v7 }
 0x41e   :  { %2441 = vmatmul.msk.f32.gmra.mxu0 %vm1794_vm15, %v1749_v2 }
 0x420   :  { %2473 = vmatmul.msk.f32.gmra.mxu3 %vm1794_vm15, %v1749_v2 }
 0x423   :  { %v4336_v59 = vpop.f32.mrf.mxu3 }
 0x424   :  { %1925 = vmatmul.f32.gmra.mxu2 %v1742_v50  ;;  %2145 = vmatmul.f32.gmra.mxu1 %v1742_v50 }
 0x426   :  { %2442 = vmatmul.msk.f32.gmra.mxu0 %vm1794_vm15, %v1751_v34 }
 0x427   :  { %v2021_v60 = vpop.f32.mrf.mxu0 }
 0x428   :  { %2474 = vmatmul.msk.f32.gmra.mxu3 %vm1794_vm15, %v1751_v34 }
 0x42b   :  { %v4346_v6 = vpop.f32.mrf.mxu3 }
 0x42c   :  { %1928 = vmatmul.f32.gmra.mxu2 %v1744_v10  ;;  %2148 = vmatmul.f32.gmra.mxu1 %v1744_v10 }
 0x42e   :  { %2443 = vmatmul.msk.f32.gmra.mxu0 %vm1794_vm15, %v1753_v33 }
 0x42f   :  { %v2024_v37 = vpop.f32.mrf.mxu0 }
 0x430   :  { %2475 = vmatmul.msk.f32.gmra.mxu3 %vm1794_vm15, %v1753_v33  ;;  %v1770_v33 = vld [vmem:[%s4731_s1 + $0x130] sm:$0xff] }
 0x433   :  { %v4356_v55 = vpop.f32.mrf.mxu3 }
 0x434   :  { %1931 = vmatmul.f32.gmra.mxu2 %v1746_v57  ;;  %2151 = vmatmul.f32.gmra.mxu1 %v1746_v57 }
 0x436   :  { %2444 = vmatmul.msk.f32.gmra.mxu0 %vm1794_vm15, %v1755_v27 }
 0x437   :  { %v2027_v52 = vpop.f32.mrf.mxu0 }
 0x438   :  { %2476 = vmatmul.msk.f32.gmra.mxu3 %vm1794_vm15, %v1755_v27 }
 0x43b   :  { %v4366_v14 = vpop.f32.mrf.mxu3 }
 0x43c   :  { %1934 = vmatmul.f32.gmra.mxu2 %v1748_v8  ;;  %2154 = vmatmul.f32.gmra.mxu1 %v1748_v8 }
 0x43e   :  { %2445 = vmatmul.msk.f32.gmra.mxu0 %vm1794_vm15, %v1757_v62 }
 0x43f   :  { %v2030_v32 = vpop.f32.mrf.mxu0 }
 0x440   :  { %2477 = vmatmul.msk.f32.gmra.mxu3 %vm1794_vm15, %v1757_v62 }
 0x443   :  { %v4376_v12 = vpop.f32.mrf.mxu3 }
 0x444   :  { %1937 = vmatmul.f32.gmra.mxu2 %v1750_v51  ;;  %2157 = vmatmul.f32.gmra.mxu1 %v1750_v51 }
 0x446   :  { %2446 = vmatmul.msk.f32.gmra.mxu0 %vm1794_vm15, %v1759_v47 }
 0x448   :  { %2478 = vmatmul.msk.f32.gmra.mxu3 %vm1794_vm15, %v1759_v47  ;;  %v1772_v47 = vld [vmem:[%s4731_s1 + $0x140] sm:$0xff] }
 0x44b   :  { %v4386_v58 = vpop.f32.mrf.mxu3 }
 0x44c   :  { %1940 = vmatmul.f32.gmra.mxu2 %v1752_v1  ;;  %2160 = vmatmul.f32.gmra.mxu1 %v1752_v1 }
 0x44e   :  { %2447 = vmatmul.msk.f32.gmra.mxu0 %vm1794_vm15, %v1761_v36 }
 0x450   :  { %2479 = vmatmul.msk.f32.gmra.mxu3 %vm1794_vm15, %v1761_v36 }
 0x453   :  { %v4396_v45 = vpop.f32.mrf.mxu3 }
 0x454   :  { %1943 = vmatmul.f32.gmra.mxu2 %v1754_v44  ;;  %2163 = vmatmul.f32.gmra.mxu1 %v1754_v44 }
 0x458   :  { %2480 = vmatmul.msk.f32.gmra.mxu3 %vm1794_vm15, %v4401_v21 }
 0x45b   :  { %v4408_v3 = vpop.f32.mrf.mxu3 }
 0x45c   :  { %1946 = vmatmul.f32.gmra.mxu2 %v1756_v61  ;;  %2166 = vmatmul.f32.gmra.mxu1 %v1756_v61 }
 0x460   :  { %2481 = vmatmul.msk.f32.gmra.mxu3 %vm1794_vm15, %v4098_v54  ;;  %v1764_v54 = vld [vmem:[%s4731_s1 + $0x100] sm:$0xff] }
 0x463   :  { %v2241_v48 = vpop.f32.mrf.mxu3 }
 0x464   :  { %1949 = vmatmul.f32.gmra.mxu2 %v1758_v38  ;;  %2169 = vmatmul.f32.gmra.mxu1 %v1758_v38 }
 0x468   :  { %2482 = vmatmul.msk.f32.gmra.mxu3 %vm1794_vm15, %v4108_v4 }
 0x46b   :  { %v2244_v26 = vpop.f32.mrf.mxu3 }
 0x46c   :  { %1952 = vmatmul.f32.gmra.mxu2 %v1760_v22  ;;  %2172 = vmatmul.f32.gmra.mxu1 %v1760_v22  ;;  %v1774_v22 = vld [vmem:[%s4731_s1 + $0x150] sm:$0xff] }
 0x470   :  { %2483 = vmatmul.msk.f32.gmra.mxu3 %vm1794_vm15, %v4121_v53 }
 0x473   :  { %v2247_v29 = vpop.f32.mrf.mxu3 }
 0x474   :  { %1955 = vmatmul.f32.gmra.mxu2 %v1762_v23  ;;  %2175 = vmatmul.f32.gmra.mxu1 %v1762_v23 }
 0x478   :  { %2484 = vmatmul.msk.f32.gmra.mxu3 %vm1794_vm15, %v4133_v24 }
 0x479   :  { %v2131_v30 = vpop.f32.mrf.mxu1 }
 0x47a   :  { %v2242_v13 = vadd.f32 %v2241_v48, %v2131_v30 }
 0x47b   :  { %v2250_v17 = vpop.f32.mrf.mxu3  ;;  %v2033_v2 = vpop.f32.mrf.mxu0 }
 0x47c   :  { %1958 = vmatmul.f32.gmra.mxu2 %v1764_v54  ;;  %2335 = vst.msk [vmem:[%s4732_s4 + $0x8] sm:$0xff] %vm79_vm1, %v2242_v13  ;;  %2178 = vmatmul.f32.gmra.mxu1 %v1764_v54  ;;  %v1776_v54 = vld [vmem:[%s4731_s1 + $0x160] sm:$0xff] }
 0x47f   :  { %v1911_v4 = vpop.f32.mrf.mxu2 }
 0x480   :  { %v2022_v53 = vadd.f32 %v2021_v60, %v1911_v4  ;;  %2485 = vmatmul.msk.f32.gmra.mxu3 %vm1794_vm15, %v4144_v25 }
 0x481   :  { %v2134_v5 = vpop.f32.mrf.mxu1 }
 0x482   :  { %2334 = vst [vmem:[%s4732_s4] sm:$0xff] %v2022_v53  ;;  %v2245_v31 = vadd.f32 %v2244_v26, %v2134_v5 }
 0x483   :  { %v2253_v34 = vpop.f32.mrf.mxu3  ;;  %v2036_v62 = vpop.f32.mrf.mxu0 }
 0x484   :  { %1961 = vmatmul.f32.gmra.mxu2 %v1766_v19  ;;  %2337 = vst.msk [vmem:[%s4732_s4 + $0x18] sm:$0xff] %vm79_vm1, %v2245_v31  ;;  %2181 = vmatmul.f32.gmra.mxu1 %v1766_v19 }
 0x487   :  { %v1914_v24 = vpop.f32.mrf.mxu2 }
 0x488   :  { %v2025_v7 = vadd.f32 %v2024_v37, %v1914_v24  ;;  %2486 = vmatmul.msk.f32.gmra.mxu3 %vm1794_vm15, %v4153_v63  ;;  %v1780_v24 = vld [vmem:[%s4731_s1 + $0x180] sm:$0xff] }
 0x489   :  { %v2137_v50 = vpop.f32.mrf.mxu1 }
 0x48a   :  { %2336 = vst [vmem:[%s4732_s4 + $0x10] sm:$0xff] %v2025_v7  ;;  %v2248_v10 = vadd.f32 %v2247_v29, %v2137_v50 }
 0x48b   :  { %v2256_v51 = vpop.f32.mrf.mxu3 }
 0x48c   :  { %1964 = vmatmul.f32.gmra.mxu2 %v1768_v9  ;;  %2339 = vst.msk [vmem:[%s4732_s4 + $0x28] sm:$0xff] %vm79_vm1, %v2248_v10  ;;  %2184 = vmatmul.f32.gmra.mxu1 %v1768_v9 }
 0x48f   :  { %v1917_v25 = vpop.f32.mrf.mxu2 }
 0x490   :  { %v2028_v57 = vadd.f32 %v2027_v52, %v1917_v25  ;;  %2487 = vmatmul.msk.f32.gmra.mxu3 %vm1794_vm15, %v4164_v39  ;;  %v2039_v39 = vpop.f32.mrf.mxu0 }
 0x491   :  { %v2140_v8 = vpop.f32.mrf.mxu1 }
 0x492   :  { %2338 = vst [vmem:[%s4732_s4 + $0x20] sm:$0xff] %v2028_v57  ;;  %v2251_v27 = vadd.f32 %v2250_v17, %v2140_v8 }
 0x493   :  { %v2259_v61 = vpop.f32.mrf.mxu3 }
 0x494   :  { %1967 = vmatmul.f32.gmra.mxu2 %v1770_v33  ;;  %2341 = vst.msk [vmem:[%s4732_s4 + $0x38] sm:$0xff] %vm79_vm1, %v2251_v27  ;;  %2187 = vmatmul.f32.gmra.mxu1 %v1770_v33 }
 0x497   :  { %v1920_v63 = vpop.f32.mrf.mxu2 }
 0x498   :  { %v2031_v1 = vadd.f32 %v2030_v32, %v1920_v63  ;;  %2488 = vmatmul.msk.f32.gmra.mxu3 %vm1794_vm15, %v4171_v49  ;;  %v2042_v26 = vpop.f32.mrf.mxu0  ;;  %v1778_v32 = vld [vmem:[%s4731_s1 + $0x170] sm:$0xff] }
 0x499   :  { %v2143_v44 = vpop.f32.mrf.mxu1 }
 0x49a   :  { %2340 = vst [vmem:[%s4732_s4 + $0x30] sm:$0xff] %v2031_v1  ;;  %v2254_v36 = vadd.f32 %v2253_v34, %v2143_v44  ;;  %v1782_v34 = vld [vmem:[%s4731_s1 + $0x190] sm:$0xff] }
 0x49b   :  { %v2262_v23 = vpop.f32.mrf.mxu3 }
 0x49c   :  { %1970 = vmatmul.f32.gmra.mxu2 %v1772_v47  ;;  %2343 = vst.msk [vmem:[%s4732_s4 + $0x48] sm:$0xff] %vm79_vm1, %v2254_v36  ;;  %2190 = vmatmul.f32.gmra.mxu1 %v1772_v47  ;;  %v1786_v36 = vld [vmem:[%s4731_s1 + $0x1b0] sm:$0xff] }
 0x49f   :  { %v1923_v38 = vpop.f32.mrf.mxu2 }
 0x4a0   :  { %v2034_v60 = vadd.f32 %v2033_v2, %v1923_v38  ;;  %2489 = vmatmul.msk.f32.gmra.mxu3 %vm1794_vm15, %v4184_v43  ;;  %v2045_v53 = vpop.f32.mrf.mxu0 }
 0x4a1   :  { %v2146_v48 = vpop.f32.mrf.mxu1 }
 0x4a2   :  { %2342 = vst [vmem:[%s4732_s4 + $0x40] sm:$0xff] %v2034_v60  ;;  %v2257_v37 = vadd.f32 %v2256_v51, %v2146_v48  ;;  %v1784_v51 = vld [vmem:[%s4731_s1 + $0x1a0] sm:$0xff] }
 0x4a3   :  { %v2265_v29 = vpop.f32.mrf.mxu3 }
 0x4a4   :  { %1973 = vmatmul.f32.gmra.mxu2 %v1774_v22  ;;  %2345 = vst.msk [vmem:[%s4732_s4 + $0x58] sm:$0xff] %vm79_vm1, %v2257_v37  ;;  %2193 = vmatmul.f32.gmra.mxu1 %v1774_v22  ;;  %v1788_v22 = vld [vmem:[%s4731_s1 + $0x1c0] sm:$0xff] }
 0x4a7   :  { %v1926_v49 = vpop.f32.mrf.mxu2 }
 0x4a8   :  { %v2037_v52 = vadd.f32 %v2036_v62, %v1926_v49  ;;  %2490 = vmatmul.msk.f32.gmra.mxu3 %vm1794_vm15, %v4191_v41  ;;  %v2048_v2 = vpop.f32.mrf.mxu0 }
 0x4a9   :  { %v2149_v30 = vpop.f32.mrf.mxu1 }
 0x4aa   :  { %2344 = vst [vmem:[%s4732_s4 + $0x50] sm:$0xff] %v2037_v52  ;;  %v2260_v13 = vadd.f32 %v2259_v61, %v2149_v30  ;;  %v1790_v52 = vld [vmem:[%s4731_s1 + $0x1d0] sm:$0xff] }
 0x4ab   :  { %v2268_v31 = vpop.f32.mrf.mxu3 }
 0x4ac   :  { %1976 = vmatmul.f32.gmra.mxu2 %v1776_v54  ;;  %2347 = vst.msk [vmem:[%s4732_s4 + $0x68] sm:$0xff] %vm79_vm1, %v2260_v13  ;;  %2196 = vmatmul.f32.gmra.mxu1 %v1776_v54 }
 0x4af   :  { %v1929_v43 = vpop.f32.mrf.mxu2 }
 0x4b0   :  { %v2040_v4 = vadd.f32 %v2039_v39, %v1929_v43  ;;  %2491 = vmatmul.msk.f32.gmra.mxu3 %vm1794_vm15, %v4204_v46 }
 0x4b1   :  { %v2152_v19 = vpop.f32.mrf.mxu1 }
 0x4b2   :  { %2346 = vst [vmem:[%s4732_s4 + $0x60] sm:$0xff] %v2040_v4  ;;  %v2263_v5 = vadd.f32 %v2262_v23, %v2152_v19 }
 0x4b3   :  { %v2271_v50 = vpop.f32.mrf.mxu3 }
 0x4b4   :  { %1979 = vmatmul.f32.gmra.mxu2 %v1778_v32  ;;  %2349 = vst.msk [vmem:[%s4732_s4 + $0x78] sm:$0xff] %vm79_vm1, %v2263_v5  ;;  %2199 = vmatmul.f32.gmra.mxu1 %v1778_v32  ;;  %v1792_v32 = vld [vmem:[%s4731_s1 + $0x1e0] sm:$0xf] }
 0x4b7   :  { %v1932_v41 = vpop.f32.mrf.mxu2 }
 0x4b8   :  { %v2043_v17 = vadd.f32 %v2042_v26, %v1932_v41  ;;  %2492 = vmatmul.msk.f32.gmra.mxu3 %vm1794_vm15, %v4211_v40  ;;  %v2051_v40 = vpop.f32.mrf.mxu0 }
 0x4b9   :  { %v2155_v7 = vpop.f32.mrf.mxu1 }
 0x4ba   :  { %2348 = vst [vmem:[%s4732_s4 + $0x70] sm:$0xff] %v2043_v17  ;;  %v2266_v9 = vadd.f32 %v2265_v29, %v2155_v7 }
 0x4bb   :  { %v2274_v33 = vpop.f32.mrf.mxu3 }
 0x4bc   :  { %1982 = vmatmul.f32.gmra.mxu2 %v1780_v24  ;;  %2351 = vst.msk [vmem:[%s4732_s4 + $0x88] sm:$0xff] %vm79_vm1, %v2266_v9  ;;  %2202 = vmatmul.f32.gmra.mxu1 %v1780_v24 }
 0x4bf   :  { %v1935_v46 = vpop.f32.mrf.mxu2 }
 0x4c0   :  { %v2046_v10 = vadd.f32 %v2045_v53, %v1935_v46  ;;  %2493 = vmatmul.msk.f32.gmra.mxu3 %vm1794_vm15, %v4218_v35  ;;  %v2054_v47 = vpop.f32.mrf.mxu0 }
 0x4c1   :  { %v2158_v25 = vpop.f32.mrf.mxu1 }
 0x4c2   :  { %2350 = vst [vmem:[%s4732_s4 + $0x80] sm:$0xff] %v2046_v10  ;;  %v2269_v57 = vadd.f32 %v2268_v31, %v2158_v25 }
 0x4c3   :  { %v2277_v1 = vpop.f32.mrf.mxu3 }
 0x4c4   :  { %1985 = vmatmul.f32.gmra.mxu2 %v1782_v34  ;;  %2353 = vst.msk [vmem:[%s4732_s4 + $0x98] sm:$0xff] %vm79_vm1, %v2269_v57  ;;  %2205 = vmatmul.f32.gmra.mxu1 %v1782_v34 }
 0x4c7   :  { %v1938_v8 = vpop.f32.mrf.mxu2 }
 0x4c8   :  { %v2049_v27 = vadd.f32 %v2048_v2, %v1938_v8  ;;  %2494 = vmatmul.msk.f32.gmra.mxu3 %vm1794_vm15, %v4225_v16  ;;  %v2057_v48 = vpop.f32.mrf.mxu0 }
 0x4c9   :  { %v2161_v62 = vpop.f32.mrf.mxu1 }
 0x4ca   :  { %2352 = vst [vmem:[%s4732_s4 + $0x90] sm:$0xff] %v2049_v27  ;;  %v2272_v63 = vadd.f32 %v2271_v50, %v2161_v62 }
 0x4cb   :  { %v2280_v38 = vpop.f32.mrf.mxu3 }
 0x4cc   :  { %1988 = vmatmul.f32.gmra.mxu2 %v1784_v51  ;;  %2355 = vst.msk [vmem:[%s4732_s4 + $0xa8] sm:$0xff] %vm79_vm1, %v2272_v63  ;;  %2208 = vmatmul.f32.gmra.mxu1 %v1784_v51 }
 0x4cf   :  { %v1941_v35 = vpop.f32.mrf.mxu2 }
 0x4d0   :  { %v2052_v44 = vadd.f32 %v2051_v40, %v1941_v35  ;;  %2495 = vmatmul.msk.f32.gmra.mxu3 %vm1794_vm15, %v4232_v28  ;;  %v2060_v29 = vpop.f32.mrf.mxu0 }
 0x4d1   :  { %v2164_v61 = vpop.f32.mrf.mxu1 }
 0x4d2   :  { %2354 = vst [vmem:[%s4732_s4 + $0xa0] sm:$0xff] %v2052_v44  ;;  %v2275_v39 = vadd.f32 %v2274_v33, %v2164_v61 }
 0x4d3   :  { %v2283_v49 = vpop.f32.mrf.mxu3 }
 0x4d4   :  { %1991 = vmatmul.f32.gmra.mxu2 %v1786_v36  ;;  %2357 = vst.msk [vmem:[%s4732_s4 + $0xb8] sm:$0xff] %vm79_vm1, %v2275_v39  ;;  %2211 = vmatmul.f32.gmra.mxu1 %v1786_v36 }
 0x4d7   :  { %v1944_v16 = vpop.f32.mrf.mxu2 }
 0x4d8   :  { %v2055_v60 = vadd.f32 %v2054_v47, %v1944_v16  ;;  %v2063_v31 = vpop.f32.mrf.mxu0 }
 0x4d9   :  { %v2167_v37 = vpop.f32.mrf.mxu1 }
 0x4da   :  { %2356 = vst [vmem:[%s4732_s4 + $0xb0] sm:$0xff] %v2055_v60  ;;  %v2278_v23 = vadd.f32 %v2277_v1, %v2167_v37 }
 0x4db   :  { %v2286_v13 = vpop.f32.mrf.mxu3 }
 0x4dc   :  { %1994 = vmatmul.f32.gmra.mxu2 %v1788_v22  ;;  %2359 = vst.msk [vmem:[%s4732_s4 + $0xc8] sm:$0xff] %vm79_vm1, %v2278_v23  ;;  %2214 = vmatmul.f32.gmra.mxu1 %v1788_v22 }
 0x4df   :  { %v1947_v28 = vpop.f32.mrf.mxu2 }
 0x4e0   :  { %v2058_v26 = vadd.f32 %v2057_v48, %v1947_v28 }
 0x4e1   :  { %v2170_v54 = vpop.f32.mrf.mxu1 }
 0x4e2   :  { %2358 = vst [vmem:[%s4732_s4 + $0xc0] sm:$0xff] %v2058_v26  ;;  %v2281_v30 = vadd.f32 %v2280_v38, %v2170_v54 }
 0x4e3   :  { %v2289_v5 = vpop.f32.mrf.mxu3 }
 0x4e4   :  { %1997 = vmatmul.f32.gmra.mxu2 %v1790_v52  ;;  %2361 = vst.msk [vmem:[%s4732_s4 + $0xd8] sm:$0xff] %vm79_vm1, %v2281_v30  ;;  %2217 = vmatmul.f32.gmra.mxu1 %v1790_v52 }
 0x4e7   :  { %v1950_v43 = vpop.f32.mrf.mxu2 }
 0x4e8   :  { %v2061_v4 = vadd.f32 %v2060_v29, %v1950_v43 }
 0x4e9   :  { %v2173_v53 = vpop.f32.mrf.mxu1 }
 0x4ea   :  { %2360 = vst [vmem:[%s4732_s4 + $0xd0] sm:$0xff] %v2061_v4  ;;  %v2284_v19 = vadd.f32 %v2283_v49, %v2173_v53 }
 0x4eb   :  { %v2292_v9 = vpop.f32.mrf.mxu3 }
 0x4ec   :  { %2000 = vmatmul.f32.gmra.mxu2 %v1792_v32  ;;  %2363 = vst.msk [vmem:[%s4732_s4 + $0xe8] sm:$0xff] %vm79_vm1, %v2284_v19  ;;  %2220 = vmatmul.f32.gmra.mxu1 %v1792_v32 }
 0x4ef   :  { %v1953_v41 = vpop.f32.mrf.mxu2 }
 0x4f0   :  { %v2064_v17 = vadd.f32 %v2063_v31, %v1953_v41 }
 0x4f1   :  { %v2176_v24 = vpop.f32.mrf.mxu1 }
 0x4f2   :  { %2362 = vst [vmem:[%s4732_s4 + $0xe0] sm:$0xff] %v2064_v17  ;;  %v2287_v7 = vadd.f32 %v2286_v13, %v2176_v24 }
 0x4f3   :  { %v2295_v10 = vpop.f32.mrf.mxu3 }
 0x4f4   :  { %2448 = vmatmul.msk.f32.vlgmr.msra.gmra.mxu2 %vm1794_vm15, %v4401_v21  ;;  %2365 = vst.msk [vmem:[%s4732_s4 + $0xf8] sm:$0xff] %vm79_vm1, %v2287_v7 }
 0x4f7   :  { %v4602_v50 = vpop.f32.mrf.mxu2 }
 0x4f9   :  { %v2179_v2 = vpop.f32.mrf.mxu1 }
 0x4fa   :  { %v2290_v46 = vadd.f32 %v2289_v5, %v2179_v2 }
 0x4fb   :  { %v2298_v33 = vpop.f32.mrf.mxu3 }
 0x4fc   :  { %2367 = vst.msk [vmem:[%s4732_s4 + $0x108] sm:$0xff] %vm79_vm1, %v2290_v46 }
 0x4ff   :  { %v1959_v34 = vpop.f32.mrf.mxu2 }
 0x500   :  { %v2070_v25 = vadd.f32 %v4246_v20, %v1959_v34 }
 0x501   :  { %v2182_v57 = vpop.f32.mrf.mxu1 }
 0x502   :  { %2366 = vst [vmem:[%s4732_s4 + $0x100] sm:$0xff] %v2070_v25  ;;  %v2293_v21 = vadd.f32 %v2292_v9, %v2182_v57 }
 0x503   :  { %v2301_v51 = vpop.f32.mrf.mxu3 }
 0x504   :  { %2369 = vst.msk [vmem:[%s4732_s4 + $0x118] sm:$0xff] %vm79_vm1, %v2293_v21 }
 0x507   :  { %v1962_v40 = vpop.f32.mrf.mxu2 }
 0x508   :  { %v2073_v8 = vadd.f32 %v4260_v11, %v1962_v40 }
 0x509   :  { %v2185_v27 = vpop.f32.mrf.mxu1 }
 0x50a   :  { %2368 = vst [vmem:[%s4732_s4 + $0x110] sm:$0xff] %v2073_v8  ;;  %v2296_v20 = vadd.f32 %v2295_v10, %v2185_v27 }
 0x50b   :  { %v2304_v35 = vpop.f32.mrf.mxu3 }
 0x50c   :  { %2371 = vst.msk [vmem:[%s4732_s4 + $0x128] sm:$0xff] %vm79_vm1, %v2296_v20 }
 0x50f   :  { %v1965_v62 = vpop.f32.mrf.mxu2 }
 0x510   :  { %v2076_v63 = vadd.f32 %v4274_v0, %v1965_v62 }
 0x511   :  { %v2188_v1 = vpop.f32.mrf.mxu1 }
 0x512   :  { %2370 = vst [vmem:[%s4732_s4 + $0x120] sm:$0xff] %v2076_v63  ;;  %v2299_v11 = vadd.f32 %v2298_v33, %v2188_v1 }
 0x513   :  { %v2307_v61 = vpop.f32.mrf.mxu3 }
 0x514   :  { %2373 = vst.msk [vmem:[%s4732_s4 + $0x138] sm:$0xff] %vm79_vm1, %v2299_v11 }
 0x517   :  { %v1968_v47 = vpop.f32.mrf.mxu2 }
 0x518   :  { %v2079_v44 = vadd.f32 %v4288_v42, %v1968_v47 }
 0x519   :  { %v2191_v36 = vpop.f32.mrf.mxu1 }
 0x51a   :  { %2372 = vst [vmem:[%s4732_s4 + $0x130] sm:$0xff] %v2079_v44  ;;  %v2302_v0 = vadd.f32 %v2301_v51, %v2191_v36 }
 0x51b   :  { %v2310_v60 = vpop.f32.mrf.mxu3 }
 0x51c   :  { %2375 = vst.msk [vmem:[%s4732_s4 + $0x148] sm:$0xff] %vm79_vm1, %v2302_v0 }
 0x51f   :  { %v1971_v39 = vpop.f32.mrf.mxu2 }
 0x520   :  { %v2082_v38 = vadd.f32 %v4302_v15, %v1971_v39 }
 0x521   :  { %v2194_v16 = vpop.f32.mrf.mxu1 }
 0x522   :  { %2374 = vst [vmem:[%s4732_s4 + $0x140] sm:$0xff] %v2082_v38  ;;  %v2305_v42 = vadd.f32 %v2304_v35, %v2194_v16 }
 0x523   :  { %v2313_v23 = vpop.f32.mrf.mxu3 }
 0x524   :  { %2377 = vst.msk [vmem:[%s4732_s4 + $0x158] sm:$0xff] %vm79_vm1, %v2305_v42 }
 0x527   :  { %v1974_v22 = vpop.f32.mrf.mxu2 }
 0x528   :  { %v2085_v48 = vadd.f32 %v4316_v18, %v1974_v22 }
 0x529   :  { %v2197_v37 = vpop.f32.mrf.mxu1 }
 0x52a   :  { %2376 = vst [vmem:[%s4732_s4 + $0x150] sm:$0xff] %v2085_v48  ;;  %v2308_v15 = vadd.f32 %v2307_v61, %v2197_v37 }
 0x52b   :  { %v2316_v52 = vpop.f32.mrf.mxu3 }
 0x52c   :  { %2379 = vst.msk [vmem:[%s4732_s4 + $0x168] sm:$0xff] %vm79_vm1, %v2308_v15 }
 0x52f   :  { %v1977_v49 = vpop.f32.mrf.mxu2 }
 0x530   :  { %v2088_v28 = vadd.f32 %v4326_v56, %v1977_v49 }
 0x531   :  { %v2200_v26 = vpop.f32.mrf.mxu1 }
 0x532   :  { %2378 = vst [vmem:[%s4732_s4 + $0x160] sm:$0xff] %v2088_v28  ;;  %v2311_v18 = vadd.f32 %v2310_v60, %v2200_v26 }
 0x533   :  { %v2319_v43 = vpop.f32.mrf.mxu3 }
 0x534   :  { %2381 = vst.msk [vmem:[%s4732_s4 + $0x178] sm:$0xff] %vm79_vm1, %v2311_v18 }
 0x537   :  { %v1980_v54 = vpop.f32.mrf.mxu2 }
 0x538   :  { %v2091_v30 = vadd.f32 %v4336_v59, %v1980_v54 }
 0x539   :  { %v2203_v13 = vpop.f32.mrf.mxu1 }
 0x53a   :  { %2380 = vst [vmem:[%s4732_s4 + $0x170] sm:$0xff] %v2091_v30  ;;  %v2314_v56 = vadd.f32 %v2313_v23, %v2203_v13 }
 0x53b   :  { %v2322_v31 = vpop.f32.mrf.mxu3 }
 0x53c   :  { %2383 = vst.msk [vmem:[%s4732_s4 + $0x188] sm:$0xff] %vm79_vm1, %v2314_v56 }
 0x53f   :  { %v1983_v29 = vpop.f32.mrf.mxu2 }
 0x540   :  { %v2094_v4 = vadd.f32 %v4346_v6, %v1983_v29 }
 0x541   :  { %v2206_v32 = vpop.f32.mrf.mxu1 }
 0x542   :  { %2382 = vst [vmem:[%s4732_s4 + $0x180] sm:$0xff] %v2094_v4  ;;  %v2317_v59 = vadd.f32 %v2316_v52, %v2206_v32 }
 0x543   :  { %v2325_v7 = vpop.f32.mrf.mxu3 }
 0x544   :  { %2385 = vst.msk [vmem:[%s4732_s4 + $0x198] sm:$0xff] %vm79_vm1, %v2317_v59 }
 0x547   :  { %v1986_v53 = vpop.f32.mrf.mxu2 }
 0x548   :  { %v2097_v19 = vadd.f32 %v4356_v55, %v1986_v53 }
 0x549   :  { %v2209_v5 = vpop.f32.mrf.mxu1 }
 0x54a   :  { %2384 = vst [vmem:[%s4732_s4 + $0x190] sm:$0xff] %v2097_v19  ;;  %v2320_v6 = vadd.f32 %v2319_v43, %v2209_v5 }
 0x54b   :  { %v2328_v10 = vpop.f32.mrf.mxu3 }
 0x54c   :  { %2387 = vst.msk [vmem:[%s4732_s4 + $0x1a8] sm:$0xff] %vm79_vm1, %v2320_v6 }
 0x54f   :  { %v1989_v41 = vpop.f32.mrf.mxu2 }
 0x550   :  { %v2100_v17 = vadd.f32 %v4366_v14, %v1989_v41 }
 0x551   :  { %v2212_v24 = vpop.f32.mrf.mxu1 }
 0x552   :  { %2386 = vst [vmem:[%s4732_s4 + $0x1a0] sm:$0xff] %v2100_v17  ;;  %v2323_v55 = vadd.f32 %v2322_v31, %v2212_v24 }
 0x553   :  { %v2331_v33 = vpop.f32.mrf.mxu3 }
 0x554   :  { %2389 = vst.msk [vmem:[%s4732_s4 + $0x1b8] sm:$0xff] %vm79_vm1, %v2323_v55 }
 0x557   :  { %v1992_v9 = vpop.f32.mrf.mxu2 }
 0x558   :  { %v2103_v2 = vadd.f32 %v4376_v12, %v1992_v9 }
 0x559   :  { %v2215_v46 = vpop.f32.mrf.mxu1 }
 0x55a   :  { %2388 = vst [vmem:[%s4732_s4 + $0x1b0] sm:$0xff] %v2103_v2  ;;  %v2326_v14 = vadd.f32 %v2325_v7, %v2215_v46 }
 0x55c   :  { %2391 = vst.msk [vmem:[%s4732_s4 + $0x1c8] sm:$0xff] %vm79_vm1, %v2326_v14 }
 0x55f   :  { %v1995_v34 = vpop.f32.mrf.mxu2 }
 0x560   :  { %v2106_v25 = vadd.f32 %v4386_v58, %v1995_v34 }
 0x561   :  { %v2218_v57 = vpop.f32.mrf.mxu1 }
 0x562   :  { %2390 = vst [vmem:[%s4732_s4 + $0x1c0] sm:$0xff] %v2106_v25  ;;  %v2329_v12 = vadd.f32 %v2328_v10, %v2218_v57 }
 0x564   :  { %2393 = vst.msk [vmem:[%s4732_s4 + $0x1d8] sm:$0xff] %vm79_vm1, %v2329_v12 }
 0x567   :  { %v1998_v21 = vpop.f32.mrf.mxu2 }
 0x568   :  { %v2109_v40 = vadd.f32 %v4396_v45, %v1998_v21 }
 0x569   :  { %v2221_v8 = vpop.f32.mrf.mxu1 }
 0x56a   :  { %2392 = vst [vmem:[%s4732_s4 + $0x1d0] sm:$0xff] %v2109_v40  ;;  %v2332_v58 = vadd.f32 %v2331_v33, %v2221_v8 }
 0x56c   :  { %2395 = vst.msk [vmem:[%s4732_s4 + $0x1e8] sm:$0xf] %vm828_vm2, %v2332_v58 }
 0x56f   :  { %v2001_v27 = vpop.f32.mrf.mxu2 }
 0x570   :  { %v2112_v20 = vadd.f32 %v4408_v3, %v2001_v27 }
 0x572   :  { %2394 = vst [vmem:[%s4732_s4 + $0x1e0] sm:$0xf] %v2112_v20 }
 0x577   :  { %v2066_v51 = vpop.f32.mrf.mxu2 }
 0x578   :  { %v2067_v45 = vadd.f32 %v2066_v51, %v4602_v50 }
 0x57a   :  { %2364 = vst [vmem:[%s4732_s4 + $0xf0] sm:$0xff] %v2067_v45 }

</bundles_post_ra>
